<compile_context>
chip_gen: v7x
topology: tpu7x:2x2x1
jax: 0.10.0
libtpu: 0.0.40
codegen_flags: <defaults>
</compile_context>

<pallas_src>
import jax
import jax.numpy as jnp
from jax.experimental import pallas as pl
from jax.experimental.pallas import tpu as pltpu

IN_FEATURES = 3 * 32 * 32   # 3072
HIDDEN = 8
NUM_CLASSES = 10
DEFAULT_TB = 512            # 512*3072*4 B = 6 MiB per f32 x tile (12 MiB dbl-buffered)


def _round_up(n, m):
    return ((n + m - 1) // m) * m


# ---- single-qubit Bloch-vector rotations (used by the pure-JAX reference) ----
def _apply_ry(rx, ry, rz, theta):
    c, s = jnp.cos(theta), jnp.sin(theta)
    return rx * c + rz * s, ry, rz * c - rx * s


def _apply_rz(rx, ry, rz, theta):
    c, s = jnp.cos(theta), jnp.sin(theta)
    return rx * c - ry * s, rx * s + ry * c, rz


# ---- precompute fixed-rotation coefficients (wrapper-side, 9 scalars) ---------
def _fixed_rotation_coeffs(q_a, q_b):
    # M1 = Rz(a2) @ Ry(a1) @ Rz(a0) acting on the Bloch vector; we only need its
    # x- and z-columns because the state before M1 is (sin h, 0, cos h).
    a0, a1, a2 = q_a[0], q_a[1], q_a[2]
    b0, b1 = q_b[0], q_b[1]          # the final RZ(b2) never changes <Z>
    ca0, sa0 = jnp.cos(a0), jnp.sin(a0)
    ca1, sa1 = jnp.cos(a1), jnp.sin(a1)
    ca2, sa2 = jnp.cos(a2), jnp.sin(a2)
    cb0, sb0 = jnp.cos(b0), jnp.sin(b0)
    cb1, sb1 = jnp.cos(b1), jnp.sin(b1)

    m_xx = ca2 * ca1 * ca0 - sa2 * sa0
    m_yx = sa2 * ca1 * ca0 + ca2 * sa0
    m_zx = -sa1 * ca0
    m_xz = ca2 * sa1
    m_yz = sa2 * sa1
    m_zz = ca1
    # z-row of Ry(b1) @ Rz(b0): projects the final Bloch vector onto <Z>.
    w_x = -sb1 * cb0
    w_y = sb1 * sb0
    w_z = cb1
    return jnp.stack(
        [m_xx, m_xz, m_yx, m_yz, m_zx, m_zz, w_x, w_y, w_z]
    ).astype(jnp.float32)


# ---- Pallas kernel ------------------------------------------------------------
def qahfnn_kernel(coef_ref, x_ref, w1_ref, b1_ref, w2_ref, b2_ref, o_ref):
    # dense1: (TB, 3072) @ (3072, 8) + (1, 8); accumulate in f32 on the MXU.
    h = jnp.dot(x_ref[...], w1_ref[...],
                preferred_element_type=jnp.float32) + b1_ref[...]

    # quantum layer, closed form:
    #   r1 = (sin h, 0, cos h); r2 = M1 r1; <Z> = w . (RY(h) r2)
    c = jnp.cos(h)
    s = jnp.sin(h)
    m_xx = coef_ref[0]
    m_xz = coef_ref[1]
    m_yx = coef_ref[2]
    m_yz = coef_ref[3]
    m_zx = coef_ref[4]
    m_zz = coef_ref[5]
    w_x = coef_ref[6]
    w_y = coef_ref[7]
    w_z = coef_ref[8]

    r2x = m_xx * s + m_xz * c
    r2y = m_yx * s + m_yz * c
    r2z = m_zx * s + m_zz * c
    z = r2x * (w_x * c - w_z * s) + w_y * r2y + r2z * (w_x * s + w_z * c)
    qout = (z + 1.0) * 0.5

    # classifier: (TB, 8) @ (8, 10) + (1, 10), then sigmoid.
    logits = jnp.dot(qout, w2_ref[...],
                     preferred_element_type=jnp.float32) + b2_ref[...]
    o_ref[...] = jax.nn.sigmoid(logits).astype(o_ref.dtype)


# ---- wrapper ------------------------------------------------------------------
def my_model_forward(x, params, *, tb=None, use_bf16=False):
    B = x.shape[0]
    x_flat = x.reshape(B, -1).astype(jnp.float32)   # NCHW -> (B, 3072), row-major
    assert x_flat.shape[1] == IN_FEATURES

    # Batch tile: multiple of 8 sublanes (16 for bf16 packing). TB=512 keeps the
    # double-buffered x tile <= 12 MiB -> fits scoped VMEM on v5e/v6e/v7x.
    sub = 16 if use_bf16 else 8
    if tb is None:
        tb = DEFAULT_TB
    tb = max(sub, _round_up(min(tb, _round_up(B, sub)), sub))
    padded_b = _round_up(B, tb)
    if padded_b != B:
        x_flat = jnp.pad(x_flat, ((0, padded_b - B), (0, 0)))

    w1 = params["w1"]
    b1 = params["b1"].reshape(1, HIDDEN).astype(jnp.float32)
    w2 = params["w2"].astype(jnp.float32)
    b2 = params["b2"].reshape(1, NUM_CLASSES).astype(jnp.float32)
    if use_bf16:
        # Halves HBM bytes for the dominant stream (x) and W1; accumulation and
        # everything downstream stays f32.
        x_flat = x_flat.astype(jnp.bfloat16)
        w1 = w1.astype(jnp.bfloat16)
    else:
        w1 = w1.astype(jnp.float32)

    coeffs = _fixed_rotation_coeffs(params["q_a"], params["q_b"])

    grid = (padded_b // tb,)
    smem = pl.BlockSpec(memory_space=pltpu.MemorySpace.SMEM)

    out = pl.pallas_call(
        qahfnn_kernel,
        out_shape=jax.ShapeDtypeStruct((padded_b, NUM_CLASSES), jnp.float32),
        grid=grid,
        in_specs=[
            smem,                                                   # coeffs (9,)
            pl.BlockSpec((tb, IN_FEATURES), lambda i: (i, 0)),      # x tile
            pl.BlockSpec((IN_FEATURES, HIDDEN), lambda i: (0, 0)),  # w1 resident
            pl.BlockSpec((1, HIDDEN), lambda i: (0, 0)),            # b1 resident
            pl.BlockSpec((HIDDEN, NUM_CLASSES), lambda i: (0, 0)),  # w2 resident
            pl.BlockSpec((1, NUM_CLASSES), lambda i: (0, 0)),       # b2 resident
        ],
        out_specs=pl.BlockSpec((tb, NUM_CLASSES), lambda i: (i, 0)),
        compiler_params=pltpu.CompilerParams(
            dimension_semantics=("parallel",),
            vmem_limit_bytes=32 * 1024 * 1024,
        ),
    )(coeffs, x_flat, w1, b1, w2, b2)

    return out[:B]


# ---- pure-JAX reference (sequential Bloch simulation, for correctness) ---------
def reference_forward(x, params):
    B = x.shape[0]
    h = x.reshape(B, -1) @ params["w1"].astype(jnp.float32) + params["b1"]
    rx, ry, rz = jnp.zeros_like(h), jnp.zeros_like(h), jnp.ones_like(h)
    rx, ry, rz = _apply_ry(rx, ry, rz, h)
    rx, ry, rz = _apply_rz(rx, ry, rz, params["q_a"][0])
    rx, ry, rz = _apply_ry(rx, ry, rz, params["q_a"][1])
    rx, ry, rz = _apply_rz(rx, ry, rz, params["q_a"][2])
    rx, ry, rz = _apply_ry(rx, ry, rz, h)
    rx, ry, rz = _apply_rz(rx, ry, rz, params["q_b"][0])
    rx, ry, rz = _apply_ry(rx, ry, rz, params["q_b"][1])
    rx, ry, rz = _apply_rz(rx, ry, rz, params["q_b"][2])
    qout = (rz + 1.0) * 0.5
    return jax.nn.sigmoid(qout @ params["w2"] + params["b2"])


def init_params(key):
    k1, k2, k3, k4, k5, k6 = jax.random.split(key, 6)
    s1 = 1.0 / jnp.sqrt(IN_FEATURES)
    s2 = 1.0 / jnp.sqrt(HIDDEN)
    return {
        # dense1 (stored as (in, out) = W^T of torch convention)
        "w1": jax.random.uniform(k1, (IN_FEATURES, HIDDEN), jnp.float32, -s1, s1),
        "b1": jax.random.uniform(k2, (1, HIDDEN), jnp.float32, -s1, s1),
        # classifier
        "w2": jax.random.uniform(k3, (HIDDEN, NUM_CLASSES), jnp.float32, -s2, s2),
        "b2": jax.random.uniform(k4, (1, NUM_CLASSES), jnp.float32, -s2, s2),
        # quantum layer params: q_layer = [rz0, ry0, rz1], q_layer1 likewise
        "q_a": jax.random.uniform(k5, (3,), jnp.float32, 0.0, 2.0 * jnp.pi),
        "q_b": jax.random.uniform(k6, (3,), jnp.float32, 0.0, 2.0 * jnp.pi),
    }


if __name__ == "__main__":
    key = jax.random.PRNGKey(0)
    kx, kp = jax.random.split(key)
    params = init_params(kp)

    # 1) small batch, single block (default tile) -- strict f32 check
    x_small = jax.random.normal(kx, (2, 3, 32, 32), jnp.float32)
    out_small = jax.block_until_ready(my_model_forward(x_small, params))
    ref_small = reference_forward(x_small, params)
    assert out_small.shape == (2, NUM_CLASSES)
    assert jnp.all(jnp.isfinite(out_small))
    assert jnp.allclose(out_small, ref_small, atol=1e-5, rtol=1e-5)

    # 2) multi-block grid (tb=8 -> 3 grid steps with row padding) -- strict f32
    x_med = jax.random.normal(jax.random.PRNGKey(1), (20, 3, 32, 32), jnp.float32)
    out_med = jax.block_until_ready(my_model_forward(x_med, params, tb=8))
    ref_med = reference_forward(x_med, params)
    assert out_med.shape == (20, NUM_CLASSES)
    assert jnp.all(jnp.isfinite(out_med))
    assert jnp.allclose(out_med, ref_med, atol=1e-5, rtol=1e-5)

    # 3) bf16-streaming variant (half HBM bytes for x/W1), looser tolerance
    out_bf16 = jax.block_until_ready(
        my_model_forward(x_med, params, tb=16, use_bf16=True))
    assert out_bf16.shape == (20, NUM_CLASSES)
    assert jnp.all(jnp.isfinite(out_bf16))
    assert jnp.allclose(out_bf16, ref_med, atol=5e-2)

    print("KERNEL_OK")
</pallas_src>

<mosaic_0001>
module attributes {stable_mosaic.version = 11 : i64} {
  func.func @qahfnn_kernel(%arg0: i32, %arg1: memref<9xf32, #tpu.memory_space<smem>>, %arg2: memref<8x3072xf32, #tpu.memory_space<vmem>>, %arg3: memref<3072x8xf32, #tpu.memory_space<vmem>>, %arg4: memref<1x8xf32, #tpu.memory_space<vmem>>, %arg5: memref<8x10xf32, #tpu.memory_space<vmem>>, %arg6: memref<1x10xf32, #tpu.memory_space<vmem>>, %arg7: memref<8x10xf32, #tpu.memory_space<vmem>>) attributes {dimension_semantics = [#tpu.dimension_semantics<parallel>], iteration_bounds = array<i64: 1>, scalar_prefetch = 0 : i64, scratch_operands = 0 : i64, tpu.core_type = #tpu.core_type<tc>, window_params = [{transform_indices = @transform_0, window_bounds = array<i64: 9>}, {transform_indices = @transform_1, window_bounds = array<i64: 8, 3072>}, {pipeline_mode = #tpu.pipeline_mode<synchronous>, transform_indices = @transform_2, window_bounds = array<i64: 3072, 8>}, {pipeline_mode = #tpu.pipeline_mode<synchronous>, transform_indices = @transform_3, window_bounds = array<i64: 1, 8>}, {pipeline_mode = #tpu.pipeline_mode<synchronous>, transform_indices = @transform_4, window_bounds = array<i64: 8, 10>}, {pipeline_mode = #tpu.pipeline_mode<synchronous>, transform_indices = @transform_5, window_bounds = array<i64: 1, 10>}, {transform_indices = @transform_6, window_bounds = array<i64: 8, 10>}]} {
    %c0 = arith.constant 0 : index
    %c0_0 = arith.constant 0 : index
    %0 = vector.load %arg2[%c0, %c0_0] : memref<8x3072xf32, #tpu.memory_space<vmem>>, vector<8x3072xf32>
    %c0_1 = arith.constant 0 : index
    %c0_2 = arith.constant 0 : index
    %1 = vector.load %arg3[%c0_1, %c0_2] : memref<3072x8xf32, #tpu.memory_space<vmem>>, vector<3072x8xf32>
    %cst = arith.constant dense<0.000000e+00> : vector<8x8xf32>
    %2 = tpu.matmul %0, %1, %cst {dimension_numbers = #tpu.dot_dimension_numbers<[1], [0], [0], [1], [0, 0, 1, 1], [], []>} : vector<8x3072xf32>, vector<3072x8xf32>, vector<8x8xf32> -> vector<8x8xf32>
    %c0_3 = arith.constant 0 : index
    %c0_4 = arith.constant 0 : index
    %3 = vector.load %arg4[%c0_3, %c0_4] : memref<1x8xf32, #tpu.memory_space<vmem>>, vector<1x8xf32>
    %4 = vector.broadcast %3 : vector<1x8xf32> to vector<8x8xf32>
    %5 = arith.addf %2, %4 : vector<8x8xf32>
    %6 = math.cos %5 : vector<8x8xf32>
    %7 = math.sin %5 : vector<8x8xf32>
    %c0_5 = arith.constant 0 : index
    %8 = memref.load %arg1[%c0_5] : memref<9xf32, #tpu.memory_space<smem>>
    %c1 = arith.constant 1 : index
    %9 = memref.load %arg1[%c1] : memref<9xf32, #tpu.memory_space<smem>>
    %c2 = arith.constant 2 : index
    %10 = memref.load %arg1[%c2] : memref<9xf32, #tpu.memory_space<smem>>
    %c3 = arith.constant 3 : index
    %11 = memref.load %arg1[%c3] : memref<9xf32, #tpu.memory_space<smem>>
    %c4 = arith.constant 4 : index
    %12 = memref.load %arg1[%c4] : memref<9xf32, #tpu.memory_space<smem>>
    %c5 = arith.constant 5 : index
    %13 = memref.load %arg1[%c5] : memref<9xf32, #tpu.memory_space<smem>>
    %c6 = arith.constant 6 : index
    %14 = memref.load %arg1[%c6] : memref<9xf32, #tpu.memory_space<smem>>
    %c7 = arith.constant 7 : index
    %15 = memref.load %arg1[%c7] : memref<9xf32, #tpu.memory_space<smem>>
    %c8 = arith.constant 8 : index
    %16 = memref.load %arg1[%c8] : memref<9xf32, #tpu.memory_space<smem>>
    %17 = vector.broadcast %8 : f32 to vector<8x8xf32>
    %18 = arith.mulf %17, %7 : vector<8x8xf32>
    %19 = vector.broadcast %9 : f32 to vector<8x8xf32>
    %20 = arith.mulf %19, %6 : vector<8x8xf32>
    %21 = arith.addf %18, %20 : vector<8x8xf32>
    %22 = vector.broadcast %10 : f32 to vector<8x8xf32>
    %23 = arith.mulf %22, %7 : vector<8x8xf32>
    %24 = vector.broadcast %11 : f32 to vector<8x8xf32>
    %25 = arith.mulf %24, %6 : vector<8x8xf32>
    %26 = arith.addf %23, %25 : vector<8x8xf32>
    %27 = vector.broadcast %12 : f32 to vector<8x8xf32>
    %28 = arith.mulf %27, %7 : vector<8x8xf32>
    %29 = vector.broadcast %13 : f32 to vector<8x8xf32>
    %30 = arith.mulf %29, %6 : vector<8x8xf32>
    %31 = arith.addf %28, %30 : vector<8x8xf32>
    %32 = vector.broadcast %14 : f32 to vector<8x8xf32>
    %33 = arith.mulf %32, %6 : vector<8x8xf32>
    %34 = vector.broadcast %16 : f32 to vector<8x8xf32>
    %35 = arith.mulf %34, %7 : vector<8x8xf32>
    %36 = arith.subf %33, %35 : vector<8x8xf32>
    %37 = arith.mulf %21, %36 : vector<8x8xf32>
    %38 = vector.broadcast %15 : f32 to vector<8x8xf32>
    %39 = arith.mulf %38, %26 : vector<8x8xf32>
    %40 = arith.addf %37, %39 : vector<8x8xf32>
    %41 = vector.broadcast %14 : f32 to vector<8x8xf32>
    %42 = arith.mulf %41, %7 : vector<8x8xf32>
    %43 = vector.broadcast %16 : f32 to vector<8x8xf32>
    %44 = arith.mulf %43, %6 : vector<8x8xf32>
    %45 = arith.addf %42, %44 : vector<8x8xf32>
    %46 = arith.mulf %31, %45 : vector<8x8xf32>
    %47 = arith.addf %40, %46 : vector<8x8xf32>
    %cst_6 = arith.constant 1.000000e+00 : f32
    %48 = vector.broadcast %cst_6 : f32 to vector<8x8xf32>
    %49 = arith.addf %47, %48 : vector<8x8xf32>
    %cst_7 = arith.constant 5.000000e-01 : f32
    %50 = vector.broadcast %cst_7 : f32 to vector<8x8xf32>
    %51 = arith.mulf %49, %50 : vector<8x8xf32>
    %c0_8 = arith.constant 0 : index
    %c0_9 = arith.constant 0 : index
    %52 = vector.load %arg5[%c0_8, %c0_9] : memref<8x10xf32, #tpu.memory_space<vmem>>, vector<8x10xf32>
    %cst_10 = arith.constant dense<0.000000e+00> : vector<8x10xf32>
    %53 = tpu.matmul %51, %52, %cst_10 {dimension_numbers = #tpu.dot_dimension_numbers<[1], [0], [0], [1], [0, 0, 1, 1], [], []>} : vector<8x8xf32>, vector<8x10xf32>, vector<8x10xf32> -> vector<8x10xf32>
    %c0_11 = arith.constant 0 : index
    %c0_12 = arith.constant 0 : index
    %54 = vector.load %arg6[%c0_11, %c0_12] : memref<1x10xf32, #tpu.memory_space<vmem>>, vector<1x10xf32>
    %55 = vector.broadcast %54 : vector<1x10xf32> to vector<8x10xf32>
    %56 = arith.addf %53, %55 : vector<8x10xf32>
    %57 = arith.negf %56 : vector<8x10xf32>
    %58 = math.exp %57 : vector<8x10xf32>
    %cst_13 = arith.constant 1.000000e+00 : f32
    %59 = vector.broadcast %cst_13 : f32 to vector<8x10xf32>
    %60 = arith.addf %59, %58 : vector<8x10xf32>
    %61 = arith.divf %59, %60 : vector<8x10xf32>
    %c0_14 = arith.constant 0 : index
    %c0_15 = arith.constant 0 : index
    %62 = vector.load %arg7[%c0_14, %c0_15] : memref<8x10xf32, #tpu.memory_space<vmem>>, vector<8x10xf32>
    tpu.vector_store %arg7[%c0_14, %c0_15], %61 {strides = array<i32>} : memref<8x10xf32, #tpu.memory_space<vmem>>, vector<8x10xf32>,
    return
  }
  func.func @transform_0(%arg0: i32) -> i32 {
    %c0_i32 = arith.constant 0 : i32
    %c0_i32_0 = arith.constant 0 : i32
    return %c0_i32 : i32
  }
  func.func @transform_1(%arg0: i32) -> (i32, i32) {
    %c0_i32 = arith.constant 0 : i32
    %c0_i32_0 = arith.constant 0 : i32
    return %arg0, %c0_i32 : i32, i32
  }
  func.func @transform_2(%arg0: i32) -> (i32, i32) {
    %c0_i32 = arith.constant 0 : i32
    %c0_i32_0 = arith.constant 0 : i32
    %c0_i32_1 = arith.constant 0 : i32
    return %c0_i32, %c0_i32_0 : i32, i32
  }
  func.func @transform_3(%arg0: i32) -> (i32, i32) {
    %c0_i32 = arith.constant 0 : i32
    %c0_i32_0 = arith.constant 0 : i32
    %c0_i32_1 = arith.constant 0 : i32
    return %c0_i32, %c0_i32_0 : i32, i32
  }
  func.func @transform_4(%arg0: i32) -> (i32, i32) {
    %c0_i32 = arith.constant 0 : i32
    %c0_i32_0 = arith.constant 0 : i32
    %c0_i32_1 = arith.constant 0 : i32
    return %c0_i32, %c0_i32_0 : i32, i32
  }
  func.func @transform_5(%arg0: i32) -> (i32, i32) {
    %c0_i32 = arith.constant 0 : i32
    %c0_i32_0 = arith.constant 0 : i32
    %c0_i32_1 = arith.constant 0 : i32
    return %c0_i32, %c0_i32_0 : i32, i32
  }
  func.func @transform_6(%arg0: i32) -> (i32, i32) {
    %c0_i32 = arith.constant 0 : i32
    %c0_i32_0 = arith.constant 0 : i32
    return %arg0, %c0_i32 : i32, i32
  }
}

</mosaic_0001>

<bundles_post_ra>
// kernel: tpu_custom_call.1
= control target key start
LH: loop header
LB: loop body
LE: loop exit
PB: predicated region body
PF: predicated region fallthrough
CT: control target
= control target key end

     0   :  { %11 = vsyncpa [#allocation4], 0  ;;  %s3876_s0 = inlined_call_operand.vmem [shape: f32[9], index: 0, kind: input, shape index: {}]   ;;  %s3877_s1 = inlined_call_operand.vmem [shape: f32[8,3072], index: 1, kind: input, shape index: {}]   ;;  %s3878_s2 = inlined_call_operand.vmem [shape: f32[3072,8], index: 2, kind: input, shape index: {}]   ;;  %s3879_s3 = inlined_call_operand.vmem [shape: f32[1,8], index: 3, kind: input, shape index: {}]   ;;  %s3880_s4 = inlined_call_operand.vmem [shape: f32[8,10], index: 4, kind: input, shape index: {}]   ;;  %s3881_s5 = inlined_call_operand.vmem [shape: f32[1,10], index: 5, kind: input, shape index: {}]   ;;  %s3882_s6 = inlined_call_operand.hbm [shape: f32[8,10], index: 6, kind: output, shape index: {}]  }
   0x1   :  { %12 = vsyncpa [#allocation3], 0  ;;  %s19_s23 = sshll.u32 %s3876_s0, 4  ;;  %s20_s23 = int_to_ptr.vmem [resolvable:$true] %s19_s23 }
   0x2   :  { %s2497_s24 = scalar_lea.vmem %s20_s23, 16  ;;  %p2502_p1 = scmp.lt.s32.totalorder %s20_s23, %s20_s23 }
   0x3   :  { %p2498_p0 = scmp.ne.s32.totalorder %s20_s23, %s2497_s24  ;;  %p2503_p2 = scmp.lt.s32.totalorder %s2497_s24, %s2497_s24 }
   0x5   :  { %p2504_p3 = por %p2503_p2, %p2502_p1 }
   0x7   :  { %p2505_p4 = pnand %p2504_p3, %p2498_p0 }
   0x9   :  { %2508 = shalt.err (!%p2505_p4)
}
   0xa   :  { %s2535_s25 = smov [#allocation2]  }
   0xb   :  { %22 = dma.vmem_to_smem %s20_s23, 16, %s2535_s25, [#allocation4]  }
   0xc   :  { %2531 = dma.done.wait [#allocation4], 16  }
   0xd   :  { %2532 = vsyncadd [#allocation4], 4294967280 }
   0xe   :  { %36 = sfence }
   0xf   :  { %v77_v0 = vld [vmem:[%s3878_s2 + $0x80] sm:$0xff]  ;;  %v78_v1 = vld [vmem:[%s3878_s2 + $0x88] sm:$0xff]  ;;  %v79_v11 = vld [vmem:[%s3878_s2 + $0x90] sm:$0xff]  ;;  %vm2537_vm0 = vmmov 0   ;;  %s3835_s18 = sld [smem:[#allocation2 + $0x1]]  ;;  %s3837_s19 = sld [smem:[#allocation2 + $0x2]] }
  0x10   :  { %v61_v2 = vld [vmem:[%s3878_s2] sm:$0xff]  ;;  %v2091_v3 = vpack.c.bf16 %v78_v1, %v77_v0  ;;  %v62_v4 = vld [vmem:[%s3878_s2 + $0x8] sm:$0xff]  ;;  %v80_v13 = vld [vmem:[%s3878_s2 + $0x98] sm:$0xff]  ;;  %s3839_s20 = sld [smem:[#allocation2 + $0x3]]  ;;  %s3841_s21 = sld [smem:[#allocation2 + $0x4]] }
  0x11   :  { %v109_v5 = vld [vmem:[%s3878_s2 + $0x180] sm:$0xff]  ;;  %v110_v6 = vld [vmem:[%s3878_s2 + $0x188] sm:$0xff]  ;;  %v2093_v7 = vpack.c.bf16 %v62_v4, %v61_v2  ;;  %v63_v14 = vld [vmem:[%s3878_s2 + $0x10] sm:$0xff]  ;;  %v2095_v16 = vpack.c.bf16 %v80_v13, %v79_v11  ;;  %s3843_s22 = sld [smem:[#allocation2 + $0x5]]  ;;  %s3845_s23 = sld [smem:[#allocation2 + $0x6]] }
  0x12   :  { %v2123_v8 = vpack.c.bf16 %v110_v6, %v109_v5  ;;  %v93_v9 = vld [vmem:[%s3878_s2 + $0x100] sm:$0xff]  ;;  %v94_v10 = vld [vmem:[%s3878_s2 + $0x108] sm:$0xff]  ;;  %2092 = vmatprep.subr.bf16.mxu0 %v2091_v3  ;;  %v64_v15 = vld [vmem:[%s3878_s2 + $0x18] sm:$0xff]  ;;  %s3847_s24 = sld [smem:[#allocation2 + $0x8]]  ;;  %s3849_s25 = sld [smem:[#allocation2 + $0x7]] }
  0x13   :  { %v2125_v12 = vpack.c.bf16 %v94_v10, %v93_v9  ;;  %2094 = vmatpush3.bf16.msra.mxu0 %v2093_v7  ;;  %v2097_v17 = vpack.c.bf16 %v64_v15, %v63_v14  ;;  %v111_v18 = vld [vmem:[%s3878_s2 + $0x190] sm:$0xff]  ;;  %v112_v19 = vld [vmem:[%s3878_s2 + $0x198] sm:$0xff]  ;;  %v81_v23 = vld [vmem:[%s3878_s2 + $0xa0] sm:$0xff]  ;;  %s2544_s28 = smov [#allocation5]  }
  0x14   :  { %2124 = vmatprep.subr.bf16.mxu1 %v2123_v8  ;;  %v95_v20 = vld [vmem:[%s3878_s2 + $0x110] sm:$0xff]  ;;  %v2127_v21 = vpack.c.bf16 %v112_v19, %v111_v18  ;;  %v96_v22 = vld [vmem:[%s3878_s2 + $0x118] sm:$0xff]  ;;  %v82_v24 = vld [vmem:[%s3878_s2 + $0xa8] sm:$0xff]  ;;  %2096 = vmatprep.subr.bf16.mxu0 %v2095_v16  ;;  %s1635_s29 = sshll.u32 %s2544_s28, 4  ;;  %s1636_s29 = int_to_ptr.vmem [resolvable:$true] %s1635_s29 }
  0x15   :  { %2126 = vmatpush3.bf16.msra.mxu1 %v2125_v12  ;;  %v2129_v25 = vpack.c.bf16 %v96_v22, %v95_v20  ;;  %v2099_v26 = vpack.c.bf16 %v82_v24, %v81_v23  ;;  %v65_v27 = vld [vmem:[%s3878_s2 + $0x20] sm:$0xff]  ;;  %v66_v28 = vld [vmem:[%s3878_s2 + $0x28] sm:$0xff]  ;;  %v83_v35 = vld [vmem:[%s3878_s2 + $0xb0] sm:$0xff]  ;;  %s2509_s0 = scalar_lea.vmem %s1636_s29, 128  ;;  %p2514_p6 = scmp.lt.s32.totalorder %s1636_s29, %s1636_s29 }
  0x16   :  { %v113_v29 = vld [vmem:[%s3878_s2 + $0x1a0] sm:$0xff]  ;;  %2128 = vmatprep.subr.bf16.mxu1 %v2127_v21  ;;  %v114_v30 = vld [vmem:[%s3878_s2 + $0x1a8] sm:$0xff]  ;;  %v2101_v33 = vpack.c.bf16 %v66_v28, %v65_v27  ;;  %v84_v36 = vld [vmem:[%s3878_s2 + $0xb8] sm:$0xff]  ;;  %p2510_p5 = scmp.ne.s32.totalorder %s1636_s29, %s2509_s0  ;;  %p2515_p7 = scmp.lt.s32.totalorder %s2509_s0, %s2509_s0 }
  0x17   :  { %v97_v31 = vld [vmem:[%s3878_s2 + $0x120] sm:$0xff]  ;;  %v98_v32 = vld [vmem:[%s3878_s2 + $0x128] sm:$0xff]  ;;  %2098 = vmatpush3.bf16.msra.mxu0 %v2097_v17  ;;  %v2131_v34 = vpack.c.bf16 %v114_v30, %v113_v29  ;;  %v67_v37 = vld [vmem:[%s3878_s2 + $0x30] sm:$0xff]  ;;  %v2103_v39 = vpack.c.bf16 %v84_v36, %v83_v35 }
  0x18   :  { %2100 = vmatprep.subr.bf16.mxu0 %v2099_v26  ;;  %v2133_v38 = vpack.c.bf16 %v98_v32, %v97_v31  ;;  %v68_v40 = vld [vmem:[%s3878_s2 + $0x38] sm:$0xff]  ;;  %v115_v41 = vld [vmem:[%s3878_s2 + $0x1b0] sm:$0xff]  ;;  %v85_v46 = vld [vmem:[%s3878_s2 + $0xc0] sm:$0xff]  ;;  %p2516_p8 = por %p2515_p7, %p2514_p6 }
  0x19   :  { %2130 = vmatpush3.bf16.msra.mxu1 %v2129_v25  ;;  %v116_v42 = vld [vmem:[%s3878_s2 + $0x1b8] sm:$0xff]  ;;  %v99_v44 = vld [vmem:[%s3878_s2 + $0x130] sm:$0xff]  ;;  %v86_v47 = vld [vmem:[%s3878_s2 + $0xc8] sm:$0xff]  ;;  %v2105_v48 = vpack.c.bf16 %v68_v40, %v67_v37 }
  0x1a   :  { %2132 = vmatprep.subr.bf16.mxu1 %v2131_v34  ;;  %v2135_v43 = vpack.c.bf16 %v116_v42, %v115_v41  ;;  %v100_v45 = vld [vmem:[%s3878_s2 + $0x138] sm:$0xff]  ;;  %v117_v49 = vld [vmem:[%s3878_s2 + $0x1c0] sm:$0xff]  ;;  %v118_v50 = vld [vmem:[%s3878_s2 + $0x1c8] sm:$0xff]  ;;  %v2107_v52 = vpack.c.bf16 %v86_v47, %v85_v46  ;;  %p2517_p9 = pnand %p2516_p8, %p2510_p5 }
  0x1b   :  { %2102 = vmatpush3.bf16.msra.mxu0 %v2101_v33  ;;  %v2137_v51 = vpack.c.bf16 %v100_v45, %v99_v44  ;;  %v69_v53 = vld [vmem:[%s3878_s2 + $0x40] sm:$0xff]  ;;  %v70_v54 = vld [vmem:[%s3878_s2 + $0x48] sm:$0xff]  ;;  %v2139_v56 = vpack.c.bf16 %v118_v50, %v117_v49  ;;  %v87_v58 = vld [vmem:[%s3878_s2 + $0xd0] sm:$0xff] }
  0x1c   :  { %2104 = vmatprep.subr.bf16.mxu0 %v2103_v39  ;;  %v101_v55 = vld [vmem:[%s3878_s2 + $0x140] sm:$0xff]  ;;  %v102_v57 = vld [vmem:[%s3878_s2 + $0x148] sm:$0xff]  ;;  %v88_v59 = vld [vmem:[%s3878_s2 + $0xd8] sm:$0xff]  ;;  %v2109_v62 = vpack.c.bf16 %v70_v54, %v69_v53 }
  0x1d   :  { %2134 = vmatpush3.bf16.msra.mxu1 %v2133_v38  ;;  %v119_v60 = vld [vmem:[%s3878_s2 + $0x1d0] sm:$0xff]  ;;  %v120_v61 = vld [vmem:[%s3878_s2 + $0x1d8] sm:$0xff]  ;;  %v2141_v63 = vpack.c.bf16 %v102_v57, %v101_v55  ;;  %v2111_v0 = vpack.c.bf16 %v88_v59, %v87_v58  ;;  %v89_v6 = vld [vmem:[%s3878_s2 + $0xe0] sm:$0xff] }
  0x1e   :  { %2136 = vmatprep.subr.bf16.mxu1 %v2135_v43  ;;  %v71_v1 = vld [vmem:[%s3878_s2 + $0x50] sm:$0xff]  ;;  %v72_v2 = vld [vmem:[%s3878_s2 + $0x58] sm:$0xff]  ;;  %v2143_v4 = vpack.c.bf16 %v120_v61, %v119_v60  ;;  %v90_v7 = vld [vmem:[%s3878_s2 + $0xe8] sm:$0xff] }
  0x1f   :  { %2106 = vmatpush3.bf16.msra.mxu0 %v2105_v48  ;;  %v103_v3 = vld [vmem:[%s3878_s2 + $0x150] sm:$0xff]  ;;  %v104_v5 = vld [vmem:[%s3878_s2 + $0x158] sm:$0xff]  ;;  %v121_v8 = vld [vmem:[%s3878_s2 + $0x1e0] sm:$0xff]  ;;  %v2113_v10 = vpack.c.bf16 %v72_v2, %v71_v1  ;;  %v2115_v14 = vpack.c.bf16 %v90_v7, %v89_v6 }
  0x20   :  { %2108 = vmatprep.subr.bf16.mxu0 %v2107_v52  ;;  %v122_v9 = vld [vmem:[%s3878_s2 + $0x1e8] sm:$0xff]  ;;  %v73_v11 = vld [vmem:[%s3878_s2 + $0x60] sm:$0xff]  ;;  %v2145_v13 = vpack.c.bf16 %v104_v5, %v103_v3  ;;  %v91_v19 = vld [vmem:[%s3878_s2 + $0xf0] sm:$0xff] }
  0x21   :  { %2138 = vmatpush3.bf16.msra.mxu1 %v2137_v51  ;;  %v74_v12 = vld [vmem:[%s3878_s2 + $0x68] sm:$0xff]  ;;  %v105_v15 = vld [vmem:[%s3878_s2 + $0x160] sm:$0xff]  ;;  %v2147_v18 = vpack.c.bf16 %v122_v9, %v121_v8  ;;  %v92_v20 = vld [vmem:[%s3878_s2 + $0xf8] sm:$0xff] }
  0x22   :  { %2140 = vmatprep.subr.bf16.mxu1 %v2139_v56  ;;  %v106_v16 = vld [vmem:[%s3878_s2 + $0x168] sm:$0xff]  ;;  %v40_v21 = vld [vmem:[%s3877_s1 + $0x18] sm:$0xff]  ;;  %v123_v22 = vld [vmem:[%s3878_s2 + $0x1f0] sm:$0xff]  ;;  %v2117_v24 = vpack.c.bf16 %v74_v12, %v73_v11  ;;  %v2119_v26 = vpack.c.bf16 %v92_v20, %v91_v19 }
  0x23   :  { %2110 = vmatpush3.bf16.msra.mxu0 %v2109_v62  ;;  %v38_v17 = vld [vmem:[%s3877_s1 + $0x8] sm:$0xff]  ;;  %v124_v23 = vld [vmem:[%s3878_s2 + $0x1f8] sm:$0xff]  ;;  %586 = vmatprep.mubr.f32.mxu1 %v40_v21  ;;  %v2149_v25 = vpack.c.bf16 %v106_v16, %v105_v15  ;;  %v75_v27 = vld [vmem:[%s3878_s2 + $0x70] sm:$0xff] }
  0x24   :  { %2112 = vmatprep.subr.bf16.mxu0 %v2111_v0  ;;  %516 = vmatprep.mubr.f32.mxu0 %v38_v17  ;;  %v76_v28 = vld [vmem:[%s3878_s2 + $0x78] sm:$0xff]  ;;  %v107_v29 = vld [vmem:[%s3878_s2 + $0x170] sm:$0xff]  ;;  %v2151_v30 = vpack.c.bf16 %v124_v23, %v123_v22  ;;  %v141_v32 = vld [vmem:[%s3878_s2 + $0x280] sm:$0xff] }
  0x25   :  { %2142 = vmatpush3.bf16.msra.mxu1 %v2141_v63  ;;  %v108_v31 = vld [vmem:[%s3878_s2 + $0x178] sm:$0xff]  ;;  %v142_v33 = vld [vmem:[%s3878_s2 + $0x288] sm:$0xff]  ;;  %v173_v34 = vld [vmem:[%s3878_s2 + $0x380] sm:$0xff]  ;;  %v2121_v36 = vpack.c.bf16 %v76_v28, %v75_v27 }
  0x26   :  { %2144 = vmatprep.subr.bf16.mxu1 %v2143_v4  ;;  %v174_v35 = vld [vmem:[%s3878_s2 + $0x388] sm:$0xff]  ;;  %v2153_v37 = vpack.c.bf16 %v108_v31, %v107_v29  ;;  %v2155_v38 = vpack.c.bf16 %v142_v33, %v141_v32  ;;  %v125_v39 = vld [vmem:[%s3878_s2 + $0x200] sm:$0xff]  ;;  %v143_v44 = vld [vmem:[%s3878_s2 + $0x290] sm:$0xff] }
  0x27   :  { %2114 = vmatpush3.bf16.msra.mxu0 %v2113_v10  ;;  %v126_v40 = vld [vmem:[%s3878_s2 + $0x208] sm:$0xff]  ;;  %v157_v41 = vld [vmem:[%s3878_s2 + $0x300] sm:$0xff]  ;;  %v2187_v42 = vpack.c.bf16 %v174_v35, %v173_v34  ;;  %v144_v45 = vld [vmem:[%s3878_s2 + $0x298] sm:$0xff] }
  0x28   :  { %2116 = vmatprep.subr.bf16.mxu0 %v2115_v14  ;;  %v158_v43 = vld [vmem:[%s3878_s2 + $0x308] sm:$0xff]  ;;  %v175_v46 = vld [vmem:[%s3878_s2 + $0x390] sm:$0xff]  ;;  %v176_v47 = vld [vmem:[%s3878_s2 + $0x398] sm:$0xff]  ;;  %v2157_v49 = vpack.c.bf16 %v126_v40, %v125_v39  ;;  %v2159_v52 = vpack.c.bf16 %v144_v45, %v143_v44 }
  0x29   :  { %2146 = vmatpush3.bf16.msra.mxu1 %v2145_v13  ;;  %v37_v48 = vld [vmem:[%s3877_s1] sm:$0xff]  ;;  %v39_v50 = vld [vmem:[%s3877_s1 + $0x10] sm:$0xff]  ;;  %v2189_v51 = vpack.c.bf16 %v158_v43, %v157_v41  ;;  %v128_v54 = vld [vmem:[%s3878_s2 + $0x218] sm:$0xff]  ;;  %v2191_v56 = vpack.c.bf16 %v176_v47, %v175_v46 }
  0x2a   :  { %2148 = vmatprep.subr.bf16.mxu1 %v2147_v18  ;;  %v127_v53 = vld [vmem:[%s3878_s2 + $0x210] sm:$0xff]  ;;  %v160_v57 = vld [vmem:[%s3878_s2 + $0x318] sm:$0xff]  ;;  %v145_v58 = vld [vmem:[%s3878_s2 + $0x2a0] sm:$0xff] }
  0x2b   :  { %2118 = vmatpush3.bf16.msra.mxu0 %v2117_v24  ;;  %v159_v55 = vld [vmem:[%s3878_s2 + $0x310] sm:$0xff]  ;;  %v146_v59 = vld [vmem:[%s3878_s2 + $0x2a8] sm:$0xff]  ;;  %v177_v60 = vld [vmem:[%s3878_s2 + $0x3a0] sm:$0xff]  ;;  %v2161_v62 = vpack.c.bf16 %v128_v54, %v127_v53 }
  0x2c   :  { %2120 = vmatprep.subr.bf16.mxu0 %v2119_v26  ;;  %v178_v61 = vld [vmem:[%s3878_s2 + $0x3a8] sm:$0xff]  ;;  %v2193_v63 = vpack.c.bf16 %v160_v57, %v159_v55  ;;  %v2163_v0 = vpack.c.bf16 %v146_v59, %v145_v58  ;;  %v129_v1 = vld [vmem:[%s3878_s2 + $0x220] sm:$0xff]  ;;  %v147_v6 = vld [vmem:[%s3878_s2 + $0x2b0] sm:$0xff] }
  0x2d   :  { %2150 = vmatpush3.bf16.msra.mxu1 %v2149_v25  ;;  %v130_v2 = vld [vmem:[%s3878_s2 + $0x228] sm:$0xff]  ;;  %v161_v3 = vld [vmem:[%s3878_s2 + $0x320] sm:$0xff]  ;;  %v2195_v4 = vpack.c.bf16 %v178_v61, %v177_v60  ;;  %v148_v7 = vld [vmem:[%s3878_s2 + $0x2b8] sm:$0xff] }
  0x2e   :  { %2152 = vmatprep.subr.bf16.mxu1 %v2151_v30  ;;  %v162_v5 = vld [vmem:[%s3878_s2 + $0x328] sm:$0xff]  ;;  %v179_v8 = vld [vmem:[%s3878_s2 + $0x3b0] sm:$0xff]  ;;  %v180_v9 = vld [vmem:[%s3878_s2 + $0x3b8] sm:$0xff]  ;;  %v2165_v10 = vpack.c.bf16 %v130_v2, %v129_v1  ;;  %v2167_v12 = vpack.c.bf16 %v148_v7, %v147_v6 }
  0x2f   :  { %2122 = vmatpush3.bf16.msra.mxu0 %v2121_v36  ;;  %v2197_v11 = vpack.c.bf16 %v162_v5, %v161_v3  ;;  %v131_v13 = vld [vmem:[%s3878_s2 + $0x230] sm:$0xff]  ;;  %v132_v14 = vld [vmem:[%s3878_s2 + $0x238] sm:$0xff]  ;;  %v2199_v16 = vpack.c.bf16 %v180_v9, %v179_v8  ;;  %v149_v18 = vld [vmem:[%s3878_s2 + $0x2c0] sm:$0xff] }
  0x30   :  { %2156 = vmatprep.subr.bf16.mxu0 %v2155_v38  ;;  %v163_v15 = vld [vmem:[%s3878_s2 + $0x330] sm:$0xff]  ;;  %v164_v17 = vld [vmem:[%s3878_s2 + $0x338] sm:$0xff]  ;;  %v150_v19 = vld [vmem:[%s3878_s2 + $0x2c8] sm:$0xff]  ;;  %v2169_v22 = vpack.c.bf16 %v132_v14, %v131_v13 }
  0x31   :  { %2154 = vmatpush3.bf16.msra.mxu1 %v2153_v37  ;;  %v181_v20 = vld [vmem:[%s3878_s2 + $0x3c0] sm:$0xff]  ;;  %v182_v21 = vld [vmem:[%s3878_s2 + $0x3c8] sm:$0xff]  ;;  %v2201_v25 = vpack.c.bf16 %v164_v17, %v163_v15  ;;  %v2171_v26 = vpack.c.bf16 %v150_v19, %v149_v18  ;;  %v44_v29 = vld [vmem:[%s3877_s1 + $0x38] sm:$0xff] }
  0x32   :  { %2188 = vmatprep.subr.bf16.mxu1 %v2187_v42  ;;  %517 = vmatmul.mubr.f32.vlgmr.msra.gmra.mrb[0].mxu0 %v37_v48  ;;  %v133_v23 = vld [vmem:[%s3878_s2 + $0x240] sm:$0xff]  ;;  %v42_v24 = vld [vmem:[%s3877_s1 + $0x28] sm:$0xff]  ;;  %v2203_v30 = vpack.c.bf16 %v182_v21, %v181_v20  ;;  %v151_v32 = vld [vmem:[%s3878_s2 + $0x2d0] sm:$0xff] }
  0x33   :  { %2158 = vmatpush3.bf16.msra.mxu0 %v2157_v49  ;;  %v134_v27 = vld [vmem:[%s3878_s2 + $0x248] sm:$0xff]  ;;  %v165_v28 = vld [vmem:[%s3878_s2 + $0x340] sm:$0xff]  ;;  %v152_v33 = vld [vmem:[%s3878_s2 + $0x2d8] sm:$0xff]  ;;  %656 = vmatprep.mubr.f32.mxu0 %v42_v24 }
  0x34   :  { %587 = vmatmul.mubr.f32.vlgmr.msra.gmra.mrb[0].mxu1 %v39_v50  ;;  %2160 = vmatprep.subr.bf16.mxu0 %v2159_v52  ;;  %v166_v31 = vld [vmem:[%s3878_s2 + $0x348] sm:$0xff]  ;;  %v183_v34 = vld [vmem:[%s3878_s2 + $0x3d0] sm:$0xff]  ;;  %v184_v35 = vld [vmem:[%s3878_s2 + $0x3d8] sm:$0xff]  ;;  %v2173_v36 = vpack.c.bf16 %v134_v27, %v133_v23  ;;  %v2175_v38 = vpack.c.bf16 %v152_v33, %v151_v32 }
  0x35   :  { %2190 = vmatpush3.bf16.msra.mxu1 %v2189_v51  ;;  %726 = vmatprep.mubr.f32.mxu1 %v44_v29  ;;  %v2205_v37 = vpack.c.bf16 %v166_v31, %v165_v28  ;;  %v135_v39 = vld [vmem:[%s3878_s2 + $0x250] sm:$0xff]  ;;  %v136_v40 = vld [vmem:[%s3878_s2 + $0x258] sm:$0xff]  ;;  %v2207_v42 = vpack.c.bf16 %v184_v35, %v183_v34  ;;  %v153_v44 = vld [vmem:[%s3878_s2 + $0x2e0] sm:$0xff] }
  0x36   :  { %2192 = vmatprep.subr.bf16.mxu1 %v2191_v56  ;;  %v167_v41 = vld [vmem:[%s3878_s2 + $0x350] sm:$0xff]  ;;  %v168_v43 = vld [vmem:[%s3878_s2 + $0x358] sm:$0xff]  ;;  %v154_v45 = vld [vmem:[%s3878_s2 + $0x2e8] sm:$0xff]  ;;  %v2177_v48 = vpack.c.bf16 %v136_v40, %v135_v39 }
  0x37   :  { %2162 = vmatpush3.bf16.msra.mxu0 %v2161_v62  ;;  %v185_v46 = vld [vmem:[%s3878_s2 + $0x3e0] sm:$0xff]  ;;  %v186_v47 = vld [vmem:[%s3878_s2 + $0x3e8] sm:$0xff]  ;;  %v2209_v49 = vpack.c.bf16 %v168_v43, %v167_v41  ;;  %v2179_v50 = vpack.c.bf16 %v154_v45, %v153_v44  ;;  %v155_v56 = vld [vmem:[%s3878_s2 + $0x2f0] sm:$0xff] }
  0x38   :  { %2164 = vmatprep.subr.bf16.mxu0 %v2163_v0  ;;  %v137_v51 = vld [vmem:[%s3878_s2 + $0x260] sm:$0xff]  ;;  %v138_v52 = vld [vmem:[%s3878_s2 + $0x268] sm:$0xff]  ;;  %v2211_v54 = vpack.c.bf16 %v186_v47, %v185_v46  ;;  %v156_v57 = vld [vmem:[%s3878_s2 + $0x2f8] sm:$0xff] }
  0x39   :  { %2194 = vmatpush3.bf16.msra.mxu1 %v2193_v63  ;;  %v169_v53 = vld [vmem:[%s3878_s2 + $0x360] sm:$0xff]  ;;  %v170_v55 = vld [vmem:[%s3878_s2 + $0x368] sm:$0xff]  ;;  %v187_v58 = vld [vmem:[%s3878_s2 + $0x3f0] sm:$0xff]  ;;  %v2181_v60 = vpack.c.bf16 %v138_v52, %v137_v51  ;;  %v2183_v62 = vpack.c.bf16 %v156_v57, %v155_v56 }
  0x3a   :  { %2196 = vmatprep.subr.bf16.mxu1 %v2195_v4  ;;  %v188_v59 = vld [vmem:[%s3878_s2 + $0x3f8] sm:$0xff]  ;;  %v2213_v61 = vpack.c.bf16 %v170_v55, %v169_v53  ;;  %v139_v63 = vld [vmem:[%s3878_s2 + $0x270] sm:$0xff]  ;;  %v205_v4 = vld [vmem:[%s3878_s2 + $0x480] sm:$0xff] }
  0x3b   :  { %2166 = vmatpush3.bf16.msra.mxu0 %v2165_v10  ;;  %v140_v0 = vld [vmem:[%s3878_s2 + $0x278] sm:$0xff]  ;;  %v171_v1 = vld [vmem:[%s3878_s2 + $0x370] sm:$0xff]  ;;  %v2215_v2 = vpack.c.bf16 %v188_v59, %v187_v58  ;;  %v206_v5 = vld [vmem:[%s3878_s2 + $0x488] sm:$0xff] }
  0x3c   :  { %2168 = vmatprep.subr.bf16.mxu0 %v2167_v12  ;;  %v172_v3 = vld [vmem:[%s3878_s2 + $0x378] sm:$0xff]  ;;  %v237_v6 = vld [vmem:[%s3878_s2 + $0x580] sm:$0xff]  ;;  %v238_v7 = vld [vmem:[%s3878_s2 + $0x588] sm:$0xff]  ;;  %v2185_v8 = vpack.c.bf16 %v140_v0, %v139_v63  ;;  %v2219_v10 = vpack.c.bf16 %v206_v5, %v205_v4 }
  0x3d   :  { %2198 = vmatpush3.bf16.msra.mxu1 %v2197_v11  ;;  %v2217_v9 = vpack.c.bf16 %v172_v3, %v171_v1  ;;  %v189_v11 = vld [vmem:[%s3878_s2 + $0x400] sm:$0xff]  ;;  %v190_v12 = vld [vmem:[%s3878_s2 + $0x408] sm:$0xff]  ;;  %v2251_v14 = vpack.c.bf16 %v238_v7, %v237_v6  ;;  %v208_v17 = vld [vmem:[%s3878_s2 + $0x498] sm:$0xff] }
  0x3e   :  { %2200 = vmatprep.subr.bf16.mxu1 %v2199_v16  ;;  %v221_v13 = vld [vmem:[%s3878_s2 + $0x500] sm:$0xff]  ;;  %v222_v15 = vld [vmem:[%s3878_s2 + $0x508] sm:$0xff]  ;;  %v207_v16 = vld [vmem:[%s3878_s2 + $0x490] sm:$0xff]  ;;  %v2221_v21 = vpack.c.bf16 %v190_v12, %v189_v11 }
  0x3f   :  { %2170 = vmatpush3.bf16.msra.mxu0 %v2169_v22  ;;  %v239_v18 = vld [vmem:[%s3878_s2 + $0x590] sm:$0xff]  ;;  %v240_v19 = vld [vmem:[%s3878_s2 + $0x598] sm:$0xff]  ;;  %v41_v20 = vld [vmem:[%s3877_s1 + $0x20] sm:$0xff]  ;;  %v2253_v23 = vpack.c.bf16 %v222_v15, %v221_v13  ;;  %v2223_v24 = vpack.c.bf16 %v208_v17, %v207_v16 }
  0x40   :  { %2172 = vmatprep.subr.bf16.mxu0 %v2171_v26  ;;  %v43_v22 = vld [vmem:[%s3877_s1 + $0x30] sm:$0xff]  ;;  %v192_v26 = vld [vmem:[%s3878_s2 + $0x418] sm:$0xff]  ;;  %v2255_v28 = vpack.c.bf16 %v240_v19, %v239_v18  ;;  %v210_v31 = vld [vmem:[%s3878_s2 + $0x4a8] sm:$0xff] }
  0x41   :  { %2202 = vmatpush3.bf16.msra.mxu1 %v2201_v25  ;;  %v191_v25 = vld [vmem:[%s3878_s2 + $0x410] sm:$0xff]  ;;  %v224_v29 = vld [vmem:[%s3878_s2 + $0x518] sm:$0xff]  ;;  %v241_v32 = vld [vmem:[%s3878_s2 + $0x5a0] sm:$0xff] }
  0x42   :  { %2204 = vmatprep.subr.bf16.mxu1 %v2203_v30  ;;  %v223_v27 = vld [vmem:[%s3878_s2 + $0x510] sm:$0xff]  ;;  %v209_v30 = vld [vmem:[%s3878_s2 + $0x4a0] sm:$0xff]  ;;  %v242_v33 = vld [vmem:[%s3878_s2 + $0x5a8] sm:$0xff]  ;;  %v2225_v35 = vpack.c.bf16 %v192_v26, %v191_v25 }
  0x43   :  { %2174 = vmatpush3.bf16.msra.mxu0 %v2173_v36  ;;  %v46_v34 = vld [vmem:[%s3877_s1 + $0x48] sm:$0xff]  ;;  %v48_v36 = vld [vmem:[%s3877_s1 + $0x58] sm:$0xff]  ;;  %v193_v39 = vld [vmem:[%s3878_s2 + $0x420] sm:$0xff] }
  0x44   :  { %2176 = vmatprep.subr.bf16.mxu0 %v2175_v38  ;;  %v2227_v38 = vpack.c.bf16 %v210_v31, %v209_v30  ;;  %v194_v40 = vld [vmem:[%s3878_s2 + $0x428] sm:$0xff]  ;;  %v225_v41 = vld [vmem:[%s3878_s2 + $0x520] sm:$0xff]  ;;  %v211_v44 = vld [vmem:[%s3878_s2 + $0x4b0] sm:$0xff] }
  0x45   :  { %2206 = vmatpush3.bf16.msra.mxu1 %v2205_v37  ;;  %v2257_v37 = vpack.c.bf16 %v224_v29, %v223_v27  ;;  %v226_v43 = vld [vmem:[%s3878_s2 + $0x528] sm:$0xff]  ;;  %v212_v45 = vld [vmem:[%s3878_s2 + $0x4b8] sm:$0xff]  ;;  %v243_v46 = vld [vmem:[%s3878_s2 + $0x5b0] sm:$0xff] }
  0x46   :  { %2208 = vmatprep.subr.bf16.mxu1 %v2207_v42  ;;  %v2259_v42 = vpack.c.bf16 %v242_v33, %v241_v32  ;;  %v244_v47 = vld [vmem:[%s3878_s2 + $0x5b8] sm:$0xff]  ;;  %v195_v51 = vld [vmem:[%s3878_s2 + $0x430] sm:$0xff]  ;;  %v213_v56 = vld [vmem:[%s3878_s2 + $0x4c0] sm:$0xff] }
  0x47   :  { %2178 = vmatpush3.bf16.msra.mxu0 %v2177_v48  ;;  %v2229_v48 = vpack.c.bf16 %v194_v40, %v193_v39  ;;  %v196_v52 = vld [vmem:[%s3878_s2 + $0x438] sm:$0xff]  ;;  %v227_v53 = vld [vmem:[%s3878_s2 + $0x530] sm:$0xff]  ;;  %v214_v57 = vld [vmem:[%s3878_s2 + $0x4c8] sm:$0xff] }
  0x48   :  { %2180 = vmatprep.subr.bf16.mxu0 %v2179_v50  ;;  %v2231_v50 = vpack.c.bf16 %v212_v45, %v211_v44  ;;  %v228_v55 = vld [vmem:[%s3878_s2 + $0x538] sm:$0xff]  ;;  %v245_v58 = vld [vmem:[%s3878_s2 + $0x5c0] sm:$0xff]  ;;  %v246_v59 = vld [vmem:[%s3878_s2 + $0x5c8] sm:$0xff] }
  0x49   :  { %2210 = vmatpush3.bf16.msra.mxu1 %v2209_v49  ;;  %v2261_v49 = vpack.c.bf16 %v226_v43, %v225_v41  ;;  %v197_v63 = vld [vmem:[%s3878_s2 + $0x440] sm:$0xff]  ;;  %v198_v0 = vld [vmem:[%s3878_s2 + $0x448] sm:$0xff]  ;;  %v215_v4 = vld [vmem:[%s3878_s2 + $0x4d0] sm:$0xff] }
  0x4a   :  { %2212 = vmatprep.subr.bf16.mxu1 %v2211_v54  ;;  %v2263_v54 = vpack.c.bf16 %v244_v47, %v243_v46  ;;  %v229_v1 = vld [vmem:[%s3878_s2 + $0x540] sm:$0xff]  ;;  %v230_v3 = vld [vmem:[%s3878_s2 + $0x548] sm:$0xff]  ;;  %v216_v5 = vld [vmem:[%s3878_s2 + $0x4d8] sm:$0xff] }
  0x4b   :  { %2182 = vmatpush3.bf16.msra.mxu0 %v2181_v60  ;;  %v2233_v60 = vpack.c.bf16 %v196_v52, %v195_v51  ;;  %v247_v6 = vld [vmem:[%s3878_s2 + $0x5d0] sm:$0xff]  ;;  %v248_v7 = vld [vmem:[%s3878_s2 + $0x5d8] sm:$0xff]  ;;  %v217_v16 = vld [vmem:[%s3878_s2 + $0x4e0] sm:$0xff] }
  0x4c   :  { %2184 = vmatprep.subr.bf16.mxu0 %v2183_v62  ;;  %v2235_v62 = vpack.c.bf16 %v214_v57, %v213_v56  ;;  %v199_v11 = vld [vmem:[%s3878_s2 + $0x450] sm:$0xff]  ;;  %v200_v12 = vld [vmem:[%s3878_s2 + $0x458] sm:$0xff]  ;;  %v218_v17 = vld [vmem:[%s3878_s2 + $0x4e8] sm:$0xff] }
  0x4d   :  { %2214 = vmatpush3.bf16.msra.mxu1 %v2213_v61  ;;  %v2265_v61 = vpack.c.bf16 %v228_v55, %v227_v53  ;;  %v231_v13 = vld [vmem:[%s3878_s2 + $0x550] sm:$0xff]  ;;  %v232_v15 = vld [vmem:[%s3878_s2 + $0x558] sm:$0xff]  ;;  %v249_v18 = vld [vmem:[%s3878_s2 + $0x5e0] sm:$0xff] }
  0x4e   :  { %2216 = vmatprep.subr.bf16.mxu1 %v2215_v2  ;;  %v2267_v2 = vpack.c.bf16 %v246_v59, %v245_v58  ;;  %v250_v19 = vld [vmem:[%s3878_s2 + $0x5e8] sm:$0xff]  ;;  %v233_v25 = vld [vmem:[%s3878_s2 + $0x560] sm:$0xff]  ;;  %v220_v29 = vld [vmem:[%s3878_s2 + $0x4f8] sm:$0xff] }
  0x4f   :  { %2186 = vmatpush3.bf16.msra.mxu0 %v2185_v8  ;;  %v2237_v8 = vpack.c.bf16 %v198_v0, %v197_v63  ;;  %v2275_v26 = vpack.c.bf16 %v250_v19, %v249_v18  ;;  %v234_v27 = vld [vmem:[%s3878_s2 + $0x568] sm:$0xff]  ;;  %v251_v30 = vld [vmem:[%s3878_s2 + $0x5f0] sm:$0xff]  ;;  %v252_v31 = vld [vmem:[%s3878_s2 + $0x5f8] sm:$0xff] }
  0x50   :  { %2220 = vmatprep.subr.bf16.mxu0 %v2219_v10  ;;  %v2239_v10 = vpack.c.bf16 %v216_v5, %v215_v4  ;;  %v2277_v33 = vpack.c.bf16 %v234_v27, %v233_v25  ;;  %v236_v39 = vld [vmem:[%s3878_s2 + $0x578] sm:$0xff]  ;;  %v269_v40 = vld [vmem:[%s3878_s2 + $0x680] sm:$0xff]  ;;  %v270_v41 = vld [vmem:[%s3878_s2 + $0x688] sm:$0xff] }
  0x51   :  { %2218 = vmatpush3.bf16.msra.mxu1 %v2217_v9  ;;  %v2269_v9 = vpack.c.bf16 %v230_v3, %v229_v1  ;;  %v302_v43 = vld [vmem:[%s3878_s2 + $0x788] sm:$0xff]  ;;  %v2283_v46 = vpack.c.bf16 %v270_v41, %v269_v40  ;;  %v253_v47 = vld [vmem:[%s3878_s2 + $0x600] sm:$0xff]  ;;  %v271_v52 = vld [vmem:[%s3878_s2 + $0x690] sm:$0xff] }
  0x52   :  { %2252 = vmatprep.subr.bf16.mxu1 %v2251_v14  ;;  %657 = vmatmul.mubr.f32.vlgmr.msra.gmra.mrb[2].mxu0 %v41_v20  ;;  %v2271_v14 = vpack.c.bf16 %v248_v7, %v247_v6  ;;  %v2241_v20 = vpack.c.bf16 %v200_v12, %v199_v11  ;;  %v286_v51 = vld [vmem:[%s3878_s2 + $0x708] sm:$0xff]  ;;  %v272_v53 = vld [vmem:[%s3878_s2 + $0x698] sm:$0xff]  ;;  %v45_v56 = vld [vmem:[%s3877_s1 + $0x40] sm:$0xff] }
  0x53   :  { %2222 = vmatpush3.bf16.msra.mxu0 %v2221_v21  ;;  %796 = vmatprep.mubr.f32.mxu0 %v46_v34  ;;  %v2273_v21 = vpack.c.bf16 %v232_v15, %v231_v13  ;;  %v304_v55 = vld [vmem:[%s3878_s2 + $0x798] sm:$0xff]  ;;  %v47_v58 = vld [vmem:[%s3877_s1 + $0x50] sm:$0xff]  ;;  %v274_v3 = vld [vmem:[%s3878_s2 + $0x6a8] sm:$0xff] }
  0x54   :  { %727 = vmatmul.mubr.f32.vlgmr.msra.gmra.mrb[2].mxu1 %v43_v22  ;;  %2224 = vmatprep.subr.bf16.mxu0 %v2223_v24  ;;  %v2243_v22 = vpack.c.bf16 %v218_v17, %v217_v16  ;;  %v202_v24 = vld [vmem:[%s3878_s2 + $0x468] sm:$0xff]  ;;  %v287_v63 = vld [vmem:[%s3878_s2 + $0x710] sm:$0xff]  ;;  %v288_v1 = vld [vmem:[%s3878_s2 + $0x718] sm:$0xff] }
  0x55   :  { %2254 = vmatpush3.bf16.msra.mxu1 %v2253_v23  ;;  %866 = vmatprep.mubr.f32.mxu1 %v48_v36  ;;  %v201_v23 = vld [vmem:[%s3878_s2 + $0x460] sm:$0xff]  ;;  %v204_v36 = vld [vmem:[%s3878_s2 + $0x478] sm:$0xff]  ;;  %v306_v5 = vld [vmem:[%s3878_s2 + $0x7a8] sm:$0xff] }
  0x56   :  { %2256 = vmatprep.subr.bf16.mxu1 %v2255_v28  ;;  %v219_v28 = vld [vmem:[%s3878_s2 + $0x4f0] sm:$0xff]  ;;  %v2245_v32 = vpack.c.bf16 %v202_v24, %v201_v23  ;;  %v305_v4 = vld [vmem:[%s3878_s2 + $0x7a0] sm:$0xff]  ;;  %v50_v6 = vld [vmem:[%s3877_s1 + $0x68] sm:$0xff] }
  0x57   :  { %2226 = vmatpush3.bf16.msra.mxu0 %v2225_v35  ;;  %v2247_v34 = vpack.c.bf16 %v220_v29, %v219_v28  ;;  %v203_v35 = vld [vmem:[%s3878_s2 + $0x470] sm:$0xff]  ;;  %v257_v11 = vld [vmem:[%s3878_s2 + $0x620] sm:$0xff]  ;;  %v258_v12 = vld [vmem:[%s3878_s2 + $0x628] sm:$0xff] }
  0x58   :  { %2228 = vmatprep.subr.bf16.mxu0 %v2227_v38  ;;  %v2279_v38 = vpack.c.bf16 %v252_v31, %v251_v30  ;;  %v2249_v44 = vpack.c.bf16 %v204_v36, %v203_v35  ;;  %v289_v13 = vld [vmem:[%s3878_s2 + $0x720] sm:$0xff]  ;;  %v290_v15 = vld [vmem:[%s3878_s2 + $0x728] sm:$0xff]  ;;  %v275_v16 = vld [vmem:[%s3878_s2 + $0x6b0] sm:$0xff] }
  0x59   :  { %2258 = vmatpush3.bf16.msra.mxu1 %v2257_v37  ;;  %v235_v37 = vld [vmem:[%s3878_s2 + $0x570] sm:$0xff]  ;;  %v276_v17 = vld [vmem:[%s3878_s2 + $0x6b8] sm:$0xff]  ;;  %v277_v28 = vld [vmem:[%s3878_s2 + $0x6c0] sm:$0xff] }
  0x5a   :  { %2260 = vmatprep.subr.bf16.mxu1 %v2259_v42  ;;  %v301_v42 = vld [vmem:[%s3878_s2 + $0x780] sm:$0xff]  ;;  %v2281_v45 = vpack.c.bf16 %v236_v39, %v235_v37  ;;  %v307_v18 = vld [vmem:[%s3878_s2 + $0x7b0] sm:$0xff]  ;;  %v308_v19 = vld [vmem:[%s3878_s2 + $0x7b8] sm:$0xff] }
  0x5b   :  { %2230 = vmatpush3.bf16.msra.mxu0 %v2229_v48  ;;  %v254_v48 = vld [vmem:[%s3878_s2 + $0x608] sm:$0xff]  ;;  %v259_v23 = vld [vmem:[%s3878_s2 + $0x630] sm:$0xff]  ;;  %v260_v24 = vld [vmem:[%s3878_s2 + $0x638] sm:$0xff] }
  0x5c   :  { %2232 = vmatprep.subr.bf16.mxu0 %v2231_v50  ;;  %v2315_v50 = vpack.c.bf16 %v302_v43, %v301_v42  ;;  %v2285_v57 = vpack.c.bf16 %v254_v48, %v253_v47  ;;  %v291_v25 = vld [vmem:[%s3878_s2 + $0x730] sm:$0xff]  ;;  %v292_v27 = vld [vmem:[%s3878_s2 + $0x738] sm:$0xff]  ;;  %v278_v29 = vld [vmem:[%s3878_s2 + $0x6c8] sm:$0xff] }
  0x5d   :  { %2262 = vmatpush3.bf16.msra.mxu1 %v2261_v49  ;;  %v285_v49 = vld [vmem:[%s3878_s2 + $0x700] sm:$0xff]  ;;  %v310_v31 = vld [vmem:[%s3878_s2 + $0x7c8] sm:$0xff]  ;;  %v279_v40 = vld [vmem:[%s3878_s2 + $0x6d0] sm:$0xff] }
  0x5e   :  { %2264 = vmatprep.subr.bf16.mxu1 %v2263_v54  ;;  %v303_v54 = vld [vmem:[%s3878_s2 + $0x790] sm:$0xff]  ;;  %v2317_v59 = vpack.c.bf16 %v286_v51, %v285_v49  ;;  %v309_v30 = vld [vmem:[%s3878_s2 + $0x7c0] sm:$0xff]  ;;  %v262_v36 = vld [vmem:[%s3878_s2 + $0x648] sm:$0xff] }
  0x5f   :  { %2234 = vmatpush3.bf16.msra.mxu0 %v2233_v60  ;;  %v2287_v60 = vpack.c.bf16 %v272_v53, %v271_v52  ;;  %v2319_v0 = vpack.c.bf16 %v304_v55, %v303_v54  ;;  %v261_v35 = vld [vmem:[%s3878_s2 + $0x640] sm:$0xff]  ;;  %v294_v39 = vld [vmem:[%s3878_s2 + $0x748] sm:$0xff]  ;;  %v280_v41 = vld [vmem:[%s3878_s2 + $0x6d8] sm:$0xff] }
  0x60   :  { %2236 = vmatprep.subr.bf16.mxu0 %v2235_v62  ;;  %v256_v62 = vld [vmem:[%s3878_s2 + $0x618] sm:$0xff]  ;;  %v293_v37 = vld [vmem:[%s3878_s2 + $0x740] sm:$0xff]  ;;  %v311_v42 = vld [vmem:[%s3878_s2 + $0x7d0] sm:$0xff] }
  0x61   :  { %2266 = vmatpush3.bf16.msra.mxu1 %v2265_v61  ;;  %v255_v61 = vld [vmem:[%s3878_s2 + $0x610] sm:$0xff]  ;;  %v312_v43 = vld [vmem:[%s3878_s2 + $0x7d8] sm:$0xff]  ;;  %v281_v52 = vld [vmem:[%s3878_s2 + $0x6e0] sm:$0xff] }
  0x62   :  { %2268 = vmatprep.subr.bf16.mxu1 %v2267_v2  ;;  %v273_v2 = vld [vmem:[%s3878_s2 + $0x6a0] sm:$0xff]  ;;  %v2289_v7 = vpack.c.bf16 %v256_v62, %v255_v61  ;;  %v263_v47 = vld [vmem:[%s3878_s2 + $0x650] sm:$0xff]  ;;  %v264_v48 = vld [vmem:[%s3878_s2 + $0x658] sm:$0xff] }
  0x63   :  { %2238 = vmatpush3.bf16.msra.mxu0 %v2237_v8  ;;  %v52_v8 = vld [vmem:[%s3877_s1 + $0x78] sm:$0xff]  ;;  %v295_v49 = vld [vmem:[%s3878_s2 + $0x750] sm:$0xff]  ;;  %v282_v53 = vld [vmem:[%s3878_s2 + $0x6e8] sm:$0xff] }
  0x64   :  { %2240 = vmatprep.subr.bf16.mxu0 %v2239_v10  ;;  %v2291_v10 = vpack.c.bf16 %v274_v3, %v273_v2  ;;  %v296_v51 = vld [vmem:[%s3878_s2 + $0x758] sm:$0xff]  ;;  %v313_v54 = vld [vmem:[%s3878_s2 + $0x7e0] sm:$0xff]  ;;  %v314_v55 = vld [vmem:[%s3878_s2 + $0x7e8] sm:$0xff] }
  0x65   :  { %2270 = vmatpush3.bf16.msra.mxu1 %v2269_v9  ;;  %v2321_v9 = vpack.c.bf16 %v288_v1, %v287_v63  ;;  %v297_v61 = vld [vmem:[%s3878_s2 + $0x760] sm:$0xff]  ;;  %v2339_v62 = vpack.c.bf16 %v314_v55, %v313_v54  ;;  %v298_v63 = vld [vmem:[%s3878_s2 + $0x768] sm:$0xff]  ;;  %v284_v1 = vld [vmem:[%s3878_s2 + $0x6f8] sm:$0xff] }
  0x66   :  { %2272 = vmatprep.subr.bf16.mxu1 %v2271_v14  ;;  %v2323_v14 = vpack.c.bf16 %v306_v5, %v305_v4  ;;  %v315_v2 = vld [vmem:[%s3878_s2 + $0x7f0] sm:$0xff]  ;;  %v316_v3 = vld [vmem:[%s3878_s2 + $0x7f8] sm:$0xff]  ;;  %v2341_v5 = vpack.c.bf16 %v298_v63, %v297_v61 }
  0x67   :  { %2242 = vmatpush3.bf16.msra.mxu0 %v2241_v20  ;;  %v2293_v20 = vpack.c.bf16 %v258_v12, %v257_v11  ;;  %v300_v11 = vld [vmem:[%s3878_s2 + $0x778] sm:$0xff]  ;;  %v333_v12 = vld [vmem:[%s3878_s2 + $0x880] sm:$0xff]  ;;  %v371_v54 = vld [vmem:[%s3878_s2 + $0x9b0] sm:$0xff] }
  0x68   :  { %2244 = vmatprep.subr.bf16.mxu0 %v2243_v22  ;;  %v2295_v22 = vpack.c.bf16 %v276_v17, %v275_v16  ;;  %v372_v55 = vld [vmem:[%s3878_s2 + $0x9b8] sm:$0xff]  ;;  %v355_v61 = vld [vmem:[%s3878_s2 + $0x930] sm:$0xff] }
  0x69   :  { %2274 = vmatpush3.bf16.msra.mxu1 %v2273_v21  ;;  %v2325_v21 = vpack.c.bf16 %v290_v15, %v289_v13  ;;  %v334_v13 = vld [vmem:[%s3878_s2 + $0x888] sm:$0xff]  ;;  %v356_v63 = vld [vmem:[%s3878_s2 + $0x938] sm:$0xff] }
  0x6a   :  { %2276 = vmatprep.subr.bf16.mxu1 %v2275_v26  ;;  %v2327_v26 = vpack.c.bf16 %v308_v19, %v307_v18  ;;  %v366_v15 = vld [vmem:[%s3878_s2 + $0x988] sm:$0xff]  ;;  %v2347_v18 = vpack.c.bf16 %v334_v13, %v333_v12  ;;  %v317_v19 = vld [vmem:[%s3878_s2 + $0x800] sm:$0xff]  ;;  %v343_v12 = vld [vmem:[%s3878_s2 + $0x8d0] sm:$0xff] }
  0x6b   :  { %2246 = vmatpush3.bf16.msra.mxu0 %v2245_v32  ;;  %v2297_v32 = vpack.c.bf16 %v260_v24, %v259_v23  ;;  %v350_v23 = vld [vmem:[%s3878_s2 + $0x908] sm:$0xff]  ;;  %v335_v24 = vld [vmem:[%s3878_s2 + $0x890] sm:$0xff]  ;;  %v344_v13 = vld [vmem:[%s3878_s2 + $0x8d8] sm:$0xff] }
  0x6c   :  { %2248 = vmatprep.subr.bf16.mxu0 %v2247_v34  ;;  %v2299_v34 = vpack.c.bf16 %v278_v29, %v277_v28  ;;  %v49_v28 = vld [vmem:[%s3877_s1 + $0x60] sm:$0xff] }
  0x6d   :  { %2278 = vmatpush3.bf16.msra.mxu1 %v2277_v33  ;;  %v2329_v33 = vpack.c.bf16 %v292_v27, %v291_v25  ;;  %v336_v25 = vld [vmem:[%s3878_s2 + $0x898] sm:$0xff] }
  0x6e   :  { %2280 = vmatprep.subr.bf16.mxu1 %v2279_v38  ;;  %v2331_v38 = vpack.c.bf16 %v310_v31, %v309_v30  ;;  %v368_v27 = vld [vmem:[%s3878_s2 + $0x998] sm:$0xff]  ;;  %v51_v30 = vld [vmem:[%s3877_s1 + $0x70] sm:$0xff] }
  0x6f   :  { %2250 = vmatpush3.bf16.msra.mxu0 %v2249_v44  ;;  %v2301_v44 = vpack.c.bf16 %v262_v36, %v261_v35  ;;  %v351_v35 = vld [vmem:[%s3878_s2 + $0x910] sm:$0xff] }
  0x70   :  { %2284 = vmatprep.subr.bf16.mxu0 %v2283_v46  ;;  %v2303_v46 = vpack.c.bf16 %v280_v41, %v279_v40  ;;  %v369_v40 = vld [vmem:[%s3878_s2 + $0x9a0] sm:$0xff]  ;;  %v370_v41 = vld [vmem:[%s3878_s2 + $0x9a8] sm:$0xff] }
  0x71   :  { %2282 = vmatpush3.bf16.msra.mxu1 %v2281_v45  ;;  %v2333_v45 = vpack.c.bf16 %v294_v39, %v293_v37  ;;  %v352_v37 = vld [vmem:[%s3878_s2 + $0x918] sm:$0xff]  ;;  %v338_v39 = vld [vmem:[%s3878_s2 + $0x8a8] sm:$0xff] }
  0x72   :  { %2316 = vmatprep.subr.bf16.mxu1 %v2315_v50  ;;  %797 = vmatmul.mubr.f32.vlgmr.msra.gmra.mrb[4].mxu0 %v45_v56  ;;  %v2335_v50 = vpack.c.bf16 %v312_v43, %v311_v42  ;;  %v2305_v56 = vpack.c.bf16 %v264_v48, %v263_v47  ;;  %v54_v42 = vld [vmem:[%s3877_s1 + $0x88] sm:$0xff]  ;;  %v321_v47 = vld [vmem:[%s3878_s2 + $0x820] sm:$0xff] }
  0x73   :  { %2286 = vmatpush3.bf16.msra.mxu0 %v2285_v57  ;;  %936 = vmatprep.mubr.f32.mxu0 %v50_v6  ;;  %v2337_v57 = vpack.c.bf16 %v296_v51, %v295_v49  ;;  %v322_v48 = vld [vmem:[%s3878_s2 + $0x828] sm:$0xff]  ;;  %v353_v49 = vld [vmem:[%s3878_s2 + $0x920] sm:$0xff] }
  0x74   :  { %867 = vmatmul.mubr.f32.vlgmr.msra.gmra.mrb[4].mxu1 %v47_v58  ;;  %2288 = vmatprep.subr.bf16.mxu0 %v2287_v60  ;;  %v2307_v58 = vpack.c.bf16 %v282_v53, %v281_v52  ;;  %v266_v60 = vld [vmem:[%s3878_s2 + $0x668] sm:$0xff]  ;;  %v339_v52 = vld [vmem:[%s3878_s2 + $0x8b0] sm:$0xff]  ;;  %v340_v53 = vld [vmem:[%s3878_s2 + $0x8b8] sm:$0xff] }
  0x75   :  { %2318 = vmatpush3.bf16.msra.mxu1 %v2317_v59  ;;  %1006 = vmatprep.mubr.f32.mxu1 %v52_v8  ;;  %v265_v59 = vld [vmem:[%s3878_s2 + $0x660] sm:$0xff]  ;;  %v268_v8 = vld [vmem:[%s3878_s2 + $0x678] sm:$0xff]  ;;  %v354_v51 = vld [vmem:[%s3878_s2 + $0x928] sm:$0xff] }
  0x76   :  { %2320 = vmatprep.subr.bf16.mxu1 %v2319_v0  ;;  %v283_v0 = vld [vmem:[%s3878_s2 + $0x6f0] sm:$0xff]  ;;  %v2309_v4 = vpack.c.bf16 %v266_v60, %v265_v59  ;;  %v324_v60 = vld [vmem:[%s3878_s2 + $0x838] sm:$0xff] }
  0x77   :  { %2290 = vmatpush3.bf16.msra.mxu0 %v2289_v7  ;;  %v2311_v6 = vpack.c.bf16 %v284_v1, %v283_v0  ;;  %v267_v7 = vld [vmem:[%s3878_s2 + $0x670] sm:$0xff]  ;;  %v341_v0 = vld [vmem:[%s3878_s2 + $0x8c0] sm:$0xff]  ;;  %v342_v1 = vld [vmem:[%s3878_s2 + $0x8c8] sm:$0xff] }
  0x78   :  { %2292 = vmatprep.subr.bf16.mxu0 %v2291_v10  ;;  %v2343_v10 = vpack.c.bf16 %v316_v3, %v315_v2  ;;  %v2313_v16 = vpack.c.bf16 %v268_v8, %v267_v7  ;;  %v323_v59 = vld [vmem:[%s3878_s2 + $0x830] sm:$0xff]  ;;  %v373_v2 = vld [vmem:[%s3878_s2 + $0x9c0] sm:$0xff]  ;;  %v374_v3 = vld [vmem:[%s3878_s2 + $0x9c8] sm:$0xff] }
  0x79   :  { %2322 = vmatpush3.bf16.msra.mxu1 %v2321_v9  ;;  %v299_v9 = vld [vmem:[%s3878_s2 + $0x770] sm:$0xff]  ;;  %v325_v7 = vld [vmem:[%s3878_s2 + $0x840] sm:$0xff]  ;;  %v326_v8 = vld [vmem:[%s3878_s2 + $0x848] sm:$0xff] }
  0x7a   :  { %2324 = vmatprep.subr.bf16.mxu1 %v2323_v14  ;;  %v365_v14 = vld [vmem:[%s3878_s2 + $0x980] sm:$0xff]  ;;  %v2345_v17 = vpack.c.bf16 %v300_v11, %v299_v9  ;;  %v358_v11 = vld [vmem:[%s3878_s2 + $0x948] sm:$0xff] }
  0x7b   :  { %2294 = vmatpush3.bf16.msra.mxu0 %v2293_v20  ;;  %v318_v20 = vld [vmem:[%s3878_s2 + $0x808] sm:$0xff]  ;;  %v357_v9 = vld [vmem:[%s3878_s2 + $0x940] sm:$0xff] }
  0x7c   :  { %2296 = vmatprep.subr.bf16.mxu0 %v2295_v22  ;;  %v2379_v22 = vpack.c.bf16 %v366_v15, %v365_v14  ;;  %v2349_v29 = vpack.c.bf16 %v318_v20, %v317_v19  ;;  %v375_v14 = vld [vmem:[%s3878_s2 + $0x9d0] sm:$0xff]  ;;  %v376_v15 = vld [vmem:[%s3878_s2 + $0x9d8] sm:$0xff] }
  0x7d   :  { %2326 = vmatpush3.bf16.msra.mxu1 %v2325_v21  ;;  %v349_v21 = vld [vmem:[%s3878_s2 + $0x900] sm:$0xff]  ;;  %v327_v19 = vld [vmem:[%s3878_s2 + $0x850] sm:$0xff]  ;;  %v328_v20 = vld [vmem:[%s3878_s2 + $0x858] sm:$0xff] }
  0x7e   :  { %2328 = vmatprep.subr.bf16.mxu1 %v2327_v26  ;;  %v367_v26 = vld [vmem:[%s3878_s2 + $0x990] sm:$0xff]  ;;  %v2381_v31 = vpack.c.bf16 %v350_v23, %v349_v21  ;;  %v360_v23 = vld [vmem:[%s3878_s2 + $0x958] sm:$0xff] }
  0x7f   :  { %2298 = vmatpush3.bf16.msra.mxu0 %v2297_v32  ;;  %v2351_v32 = vpack.c.bf16 %v336_v25, %v335_v24  ;;  %v2383_v36 = vpack.c.bf16 %v368_v27, %v367_v26  ;;  %v359_v21 = vld [vmem:[%s3878_s2 + $0x950] sm:$0xff]  ;;  %v345_v24 = vld [vmem:[%s3878_s2 + $0x8e0] sm:$0xff]  ;;  %v346_v25 = vld [vmem:[%s3878_s2 + $0x8e8] sm:$0xff] }
  0x80   :  { %2300 = vmatprep.subr.bf16.mxu0 %v2299_v34  ;;  %v320_v34 = vld [vmem:[%s3878_s2 + $0x818] sm:$0xff]  ;;  %v377_v26 = vld [vmem:[%s3878_s2 + $0x9e0] sm:$0xff]  ;;  %v378_v27 = vld [vmem:[%s3878_s2 + $0x9e8] sm:$0xff] }
  0x81   :  { %2330 = vmatpush3.bf16.msra.mxu1 %v2329_v33  ;;  %v319_v33 = vld [vmem:[%s3878_s2 + $0x810] sm:$0xff] }
  0x82   :  { %2332 = vmatprep.subr.bf16.mxu1 %v2331_v38  ;;  %v337_v38 = vld [vmem:[%s3878_s2 + $0x8a0] sm:$0xff]  ;;  %v2353_v43 = vpack.c.bf16 %v320_v34, %v319_v33  ;;  %v2403_v34 = vpack.c.bf16 %v378_v27, %v377_v26  ;;  %v435_v26 = vld [vmem:[%s3878_s2 + $0xbb0] sm:$0xff]  ;;  %v436_v27 = vld [vmem:[%s3878_s2 + $0xbb8] sm:$0xff] }
  0x83   :  { %2302 = vmatpush3.bf16.msra.mxu0 %v2301_v44  ;;  %v56_v44 = vld [vmem:[%s3877_s1 + $0x98] sm:$0xff]  ;;  %v361_v33 = vld [vmem:[%s3878_s2 + $0x960] sm:$0xff] }
  0x84   :  { %2304 = vmatprep.subr.bf16.mxu0 %v2303_v46  ;;  %v2355_v46 = vpack.c.bf16 %v338_v39, %v337_v38  ;;  %v379_v38 = vld [vmem:[%s3878_s2 + $0x9f0] sm:$0xff]  ;;  %v380_v39 = vld [vmem:[%s3878_s2 + $0x9f8] sm:$0xff] }
  0x85   :  { %2334 = vmatpush3.bf16.msra.mxu1 %v2333_v45  ;;  %v2385_v45 = vpack.c.bf16 %v352_v37, %v351_v35  ;;  %v362_v35 = vld [vmem:[%s3878_s2 + $0x968] sm:$0xff]  ;;  %v348_v37 = vld [vmem:[%s3878_s2 + $0x8f8] sm:$0xff] }
  0x86   :  { %2336 = vmatprep.subr.bf16.mxu1 %v2335_v50  ;;  %v2387_v50 = vpack.c.bf16 %v370_v41, %v369_v40  ;;  %v2405_v41 = vpack.c.bf16 %v362_v35, %v361_v33  ;;  %v419_v33 = vld [vmem:[%s3878_s2 + $0xb30] sm:$0xff]  ;;  %v420_v35 = vld [vmem:[%s3878_s2 + $0xb38] sm:$0xff] }
  0x87   :  { %2306 = vmatpush3.bf16.msra.mxu0 %v2305_v56  ;;  %v2357_v56 = vpack.c.bf16 %v322_v48, %v321_v47  ;;  %v364_v47 = vld [vmem:[%s3878_s2 + $0x978] sm:$0xff]  ;;  %v397_v48 = vld [vmem:[%s3878_s2 + $0xa80] sm:$0xff] }
  0x88   :  { %2308 = vmatprep.subr.bf16.mxu0 %v2307_v58  ;;  %v2359_v58 = vpack.c.bf16 %v340_v53, %v339_v52 }
  0x89   :  { %2338 = vmatpush3.bf16.msra.mxu1 %v2337_v57  ;;  %v2389_v57 = vpack.c.bf16 %v354_v51, %v353_v49  ;;  %v398_v49 = vld [vmem:[%s3878_s2 + $0xa88] sm:$0xff] }
  0x8a   :  { %2340 = vmatprep.subr.bf16.mxu1 %v2339_v62  ;;  %v2391_v62 = vpack.c.bf16 %v372_v55, %v371_v54  ;;  %v430_v51 = vld [vmem:[%s3878_s2 + $0xb88] sm:$0xff]  ;;  %v2411_v54 = vpack.c.bf16 %v398_v49, %v397_v48  ;;  %v381_v55 = vld [vmem:[%s3878_s2 + $0xa00] sm:$0xff]  ;;  %v407_v48 = vld [vmem:[%s3878_s2 + $0xad0] sm:$0xff] }
  0x8b   :  { %2310 = vmatpush3.bf16.msra.mxu0 %v2309_v4  ;;  %v2361_v4 = vpack.c.bf16 %v324_v60, %v323_v59  ;;  %v414_v59 = vld [vmem:[%s3878_s2 + $0xb08] sm:$0xff]  ;;  %v399_v60 = vld [vmem:[%s3878_s2 + $0xa90] sm:$0xff]  ;;  %v408_v49 = vld [vmem:[%s3878_s2 + $0xad8] sm:$0xff] }
  0x8c   :  { %2312 = vmatprep.subr.bf16.mxu0 %v2311_v6  ;;  %v2363_v6 = vpack.c.bf16 %v342_v1, %v341_v0  ;;  %v53_v0 = vld [vmem:[%s3877_s1 + $0x80] sm:$0xff] }
  0x8d   :  { %2342 = vmatpush3.bf16.msra.mxu1 %v2341_v5  ;;  %v2393_v5 = vpack.c.bf16 %v356_v63, %v355_v61  ;;  %v400_v61 = vld [vmem:[%s3878_s2 + $0xa98] sm:$0xff] }
  0x8e   :  { %2344 = vmatprep.subr.bf16.mxu1 %v2343_v10  ;;  %v2395_v10 = vpack.c.bf16 %v374_v3, %v373_v2  ;;  %v432_v63 = vld [vmem:[%s3878_s2 + $0xb98] sm:$0xff]  ;;  %v55_v2 = vld [vmem:[%s3877_s1 + $0x90] sm:$0xff] }
  0x8f   :  { %2314 = vmatpush3.bf16.msra.mxu0 %v2313_v16  ;;  %v2365_v16 = vpack.c.bf16 %v326_v8, %v325_v7  ;;  %v415_v7 = vld [vmem:[%s3878_s2 + $0xb10] sm:$0xff] }
  0x90   :  { %2348 = vmatprep.subr.bf16.mxu0 %v2347_v18  ;;  %v2367_v18 = vpack.c.bf16 %v344_v13, %v343_v12  ;;  %v433_v12 = vld [vmem:[%s3878_s2 + $0xba0] sm:$0xff]  ;;  %v434_v13 = vld [vmem:[%s3878_s2 + $0xba8] sm:$0xff] }
  0x91   :  { %2346 = vmatpush3.bf16.msra.mxu1 %v2345_v17  ;;  %v2397_v17 = vpack.c.bf16 %v358_v11, %v357_v9  ;;  %v416_v9 = vld [vmem:[%s3878_s2 + $0xb18] sm:$0xff]  ;;  %v402_v11 = vld [vmem:[%s3878_s2 + $0xaa8] sm:$0xff] }
  0x92   :  { %2380 = vmatprep.subr.bf16.mxu1 %v2379_v22  ;;  %937 = vmatmul.mubr.f32.vlgmr.msra.gmra.mrb[6].mxu0 %v49_v28  ;;  %v2399_v22 = vpack.c.bf16 %v376_v15, %v375_v14  ;;  %v2369_v28 = vpack.c.bf16 %v328_v20, %v327_v19  ;;  %v58_v14 = vld [vmem:[%s3877_s1 + $0xa8] sm:$0xff]  ;;  %v385_v19 = vld [vmem:[%s3878_s2 + $0xa20] sm:$0xff] }
  0x93   :  { %2350 = vmatpush3.bf16.msra.mxu0 %v2349_v29  ;;  %1076 = vmatprep.mubr.f32.mxu0 %v54_v42  ;;  %v2401_v29 = vpack.c.bf16 %v360_v23, %v359_v21  ;;  %v386_v20 = vld [vmem:[%s3878_s2 + $0xa28] sm:$0xff]  ;;  %v417_v21 = vld [vmem:[%s3878_s2 + $0xb20] sm:$0xff] }
  0x94   :  { %1007 = vmatmul.mubr.f32.vlgmr.msra.gmra.mrb[6].mxu1 %v51_v30  ;;  %2352 = vmatprep.subr.bf16.mxu0 %v2351_v32  ;;  %v2371_v30 = vpack.c.bf16 %v346_v25, %v345_v24  ;;  %v330_v32 = vld [vmem:[%s3878_s2 + $0x868] sm:$0xff]  ;;  %v403_v24 = vld [vmem:[%s3878_s2 + $0xab0] sm:$0xff]  ;;  %v404_v25 = vld [vmem:[%s3878_s2 + $0xab8] sm:$0xff] }
  0x95   :  { %2382 = vmatpush3.bf16.msra.mxu1 %v2381_v31  ;;  %1146 = vmatprep.mubr.f32.mxu1 %v56_v44  ;;  %v329_v31 = vld [vmem:[%s3878_s2 + $0x860] sm:$0xff]  ;;  %v332_v44 = vld [vmem:[%s3878_s2 + $0x878] sm:$0xff]  ;;  %v418_v23 = vld [vmem:[%s3878_s2 + $0xb28] sm:$0xff] }
  0x96   :  { %2384 = vmatprep.subr.bf16.mxu1 %v2383_v36  ;;  %v347_v36 = vld [vmem:[%s3878_s2 + $0x8f0] sm:$0xff]  ;;  %v2373_v40 = vpack.c.bf16 %v330_v32, %v329_v31  ;;  %v388_v32 = vld [vmem:[%s3878_s2 + $0xa38] sm:$0xff] }
  0x97   :  { %2354 = vmatpush3.bf16.msra.mxu0 %v2353_v43  ;;  %v2375_v42 = vpack.c.bf16 %v348_v37, %v347_v36  ;;  %v331_v43 = vld [vmem:[%s3878_s2 + $0x870] sm:$0xff]  ;;  %v405_v36 = vld [vmem:[%s3878_s2 + $0xac0] sm:$0xff]  ;;  %v406_v37 = vld [vmem:[%s3878_s2 + $0xac8] sm:$0xff] }
  0x98   :  { %2356 = vmatprep.subr.bf16.mxu0 %v2355_v46  ;;  %v2407_v46 = vpack.c.bf16 %v380_v39, %v379_v38  ;;  %v2377_v52 = vpack.c.bf16 %v332_v44, %v331_v43  ;;  %v387_v31 = vld [vmem:[%s3878_s2 + $0xa30] sm:$0xff]  ;;  %v437_v38 = vld [vmem:[%s3878_s2 + $0xbc0] sm:$0xff]  ;;  %v438_v39 = vld [vmem:[%s3878_s2 + $0xbc8] sm:$0xff] }
  0x99   :  { %2386 = vmatpush3.bf16.msra.mxu1 %v2385_v45  ;;  %v363_v45 = vld [vmem:[%s3878_s2 + $0x970] sm:$0xff]  ;;  %v389_v43 = vld [vmem:[%s3878_s2 + $0xa40] sm:$0xff]  ;;  %v390_v44 = vld [vmem:[%s3878_s2 + $0xa48] sm:$0xff] }
  0x9a   :  { %2388 = vmatprep.subr.bf16.mxu1 %v2387_v50  ;;  %v429_v50 = vld [vmem:[%s3878_s2 + $0xb80] sm:$0xff]  ;;  %v2409_v53 = vpack.c.bf16 %v364_v47, %v363_v45  ;;  %v422_v47 = vld [vmem:[%s3878_s2 + $0xb48] sm:$0xff] }
  0x9b   :  { %2358 = vmatpush3.bf16.msra.mxu0 %v2357_v56  ;;  %v382_v56 = vld [vmem:[%s3878_s2 + $0xa08] sm:$0xff]  ;;  %v421_v45 = vld [vmem:[%s3878_s2 + $0xb40] sm:$0xff] }
  0x9c   :  { %2360 = vmatprep.subr.bf16.mxu0 %v2359_v58  ;;  %v2443_v58 = vpack.c.bf16 %v430_v51, %v429_v50  ;;  %v2413_v1 = vpack.c.bf16 %v382_v56, %v381_v55  ;;  %v439_v50 = vld [vmem:[%s3878_s2 + $0xbd0] sm:$0xff]  ;;  %v440_v51 = vld [vmem:[%s3878_s2 + $0xbd8] sm:$0xff] }
  0x9d   :  { %2390 = vmatpush3.bf16.msra.mxu1 %v2389_v57  ;;  %v413_v57 = vld [vmem:[%s3878_s2 + $0xb00] sm:$0xff]  ;;  %v391_v55 = vld [vmem:[%s3878_s2 + $0xa50] sm:$0xff]  ;;  %v392_v56 = vld [vmem:[%s3878_s2 + $0xa58] sm:$0xff] }
  0x9e   :  { %2392 = vmatprep.subr.bf16.mxu1 %v2391_v62  ;;  %v431_v62 = vld [vmem:[%s3878_s2 + $0xb90] sm:$0xff]  ;;  %v2445_v3 = vpack.c.bf16 %v414_v59, %v413_v57  ;;  %v424_v59 = vld [vmem:[%s3878_s2 + $0xb58] sm:$0xff] }
  0x9f   :  { %2362 = vmatpush3.bf16.msra.mxu0 %v2361_v4  ;;  %v2415_v4 = vpack.c.bf16 %v400_v61, %v399_v60  ;;  %v2447_v8 = vpack.c.bf16 %v432_v63, %v431_v62  ;;  %v423_v57 = vld [vmem:[%s3878_s2 + $0xb50] sm:$0xff]  ;;  %v409_v60 = vld [vmem:[%s3878_s2 + $0xae0] sm:$0xff]  ;;  %v410_v61 = vld [vmem:[%s3878_s2 + $0xae8] sm:$0xff] }
  0xa0   :  { %2364 = vmatprep.subr.bf16.mxu0 %v2363_v6  ;;  %v384_v6 = vld [vmem:[%s3878_s2 + $0xa18] sm:$0xff]  ;;  %v441_v62 = vld [vmem:[%s3878_s2 + $0xbe0] sm:$0xff]  ;;  %v442_v63 = vld [vmem:[%s3878_s2 + $0xbe8] sm:$0xff] }
  0xa1   :  { %2394 = vmatpush3.bf16.msra.mxu1 %v2393_v5  ;;  %v383_v5 = vld [vmem:[%s3878_s2 + $0xa10] sm:$0xff] }
  0xa2   :  { %2396 = vmatprep.subr.bf16.mxu1 %v2395_v10  ;;  %v401_v10 = vld [vmem:[%s3878_s2 + $0xaa0] sm:$0xff]  ;;  %v2417_v15 = vpack.c.bf16 %v384_v6, %v383_v5  ;;  %v2467_v6 = vpack.c.bf16 %v442_v63, %v441_v62 }
  0xa3   :  { %2366 = vmatpush3.bf16.msra.mxu0 %v2365_v16  ;;  %v60_v16 = vld [vmem:[%s3877_s1 + $0xb8] sm:$0xff]  ;;  %v425_v5 = vld [vmem:[%s3878_s2 + $0xb60] sm:$0xff] }
  0xa4   :  { %2368 = vmatprep.subr.bf16.mxu0 %v2367_v18  ;;  %v2419_v18 = vpack.c.bf16 %v402_v11, %v401_v10  ;;  %v443_v10 = vld [vmem:[%s3878_s2 + $0xbf0] sm:$0xff]  ;;  %v444_v11 = vld [vmem:[%s3878_s2 + $0xbf8] sm:$0xff] }
  0xa5   :  { %2398 = vmatpush3.bf16.msra.mxu1 %v2397_v17  ;;  %v2449_v17 = vpack.c.bf16 %v416_v9, %v415_v7  ;;  %v426_v7 = vld [vmem:[%s3878_s2 + $0xb68] sm:$0xff]  ;;  %v412_v9 = vld [vmem:[%s3878_s2 + $0xaf8] sm:$0xff] }
  0xa6   :  { %2400 = vmatprep.subr.bf16.mxu1 %v2399_v22  ;;  %v2451_v22 = vpack.c.bf16 %v434_v13, %v433_v12  ;;  %v2469_v13 = vpack.c.bf16 %v426_v7, %v425_v5 }
  0xa7   :  { %2370 = vmatpush3.bf16.msra.mxu0 %v2369_v28  ;;  %v2421_v28 = vpack.c.bf16 %v386_v20, %v385_v19  ;;  %v428_v19 = vld [vmem:[%s3878_s2 + $0xb78] sm:$0xff] }
  0xa8   :  { %2372 = vmatprep.subr.bf16.mxu0 %v2371_v30  ;;  %v2423_v30 = vpack.c.bf16 %v404_v25, %v403_v24  ;;  %v1644_v25 = vld [vmem:[%s3879_s3] ss:$0 sm:$0xff] }
  0xa9   :  { %2402 = vmatpush3.bf16.msra.mxu1 %v2401_v29  ;;  %v2453_v29 = vpack.c.bf16 %v418_v23, %v417_v21  ;;  %v59_v23 = vld [vmem:[%s3877_s1 + $0xb0] sm:$0xff] }
  0xaa   :  { %2404 = vmatprep.subr.bf16.mxu1 %v2403_v34  ;;  %v2455_v34 = vpack.c.bf16 %v436_v27, %v435_v26 }
  0xab   :  { %2374 = vmatpush3.bf16.msra.mxu0 %v2373_v40  ;;  %v2425_v40 = vpack.c.bf16 %v388_v32, %v387_v31 }
  0xac   :  { %2376 = vmatprep.subr.bf16.mxu0 %v2375_v42  ;;  %v2427_v42 = vpack.c.bf16 %v406_v37, %v405_v36 }
  0xad   :  { %2406 = vmatpush3.bf16.msra.mxu1 %v2405_v41  ;;  %v2457_v41 = vpack.c.bf16 %v420_v35, %v419_v33 }
  0xae   :  { %2408 = vmatprep.subr.bf16.mxu1 %v2407_v46  ;;  %v2459_v46 = vpack.c.bf16 %v438_v39, %v437_v38 }
  0xaf   :  { %2378 = vmatpush3.bf16.msra.mxu0 %v2377_v52  ;;  %v2429_v52 = vpack.c.bf16 %v390_v44, %v389_v43 }
  0xb0   :  { %2412 = vmatprep.subr.bf16.mxu0 %v2411_v54  ;;  %v2431_v54 = vpack.c.bf16 %v408_v49, %v407_v48 }
  0xb1   :  { %2410 = vmatpush3.bf16.msra.mxu1 %v2409_v53  ;;  %v2461_v53 = vpack.c.bf16 %v422_v47, %v421_v45 }
  0xb2   :  { %2444 = vmatprep.subr.bf16.mxu1 %v2443_v58  ;;  %1077 = vmatmul.mubr.f32.vlgmr.msra.gmra.mrb[8].mxu0 %v53_v0  ;;  %v2463_v58 = vpack.c.bf16 %v440_v51, %v439_v50  ;;  %v2433_v0 = vpack.c.bf16 %v392_v56, %v391_v55 }
  0xb3   :  { %2414 = vmatpush3.bf16.msra.mxu0 %v2413_v1  ;;  %1216 = vmatprep.mubr.f32.mxu0 %v58_v14  ;;  %v2465_v1 = vpack.c.bf16 %v424_v59, %v423_v57  ;;  %v1539_v57 = vld [vmem:[%s3880_s4] sm:$0xff]  ;;  %s3833_s4 = sld [smem:[#allocation2]] }
  0xb4   :  { %1147 = vmatmul.mubr.f32.vlgmr.msra.gmra.mrb[8].mxu1 %v55_v2  ;;  %2416 = vmatprep.subr.bf16.mxu0 %v2415_v4  ;;  %v2435_v2 = vpack.c.bf16 %v410_v61, %v409_v60  ;;  %v394_v4 = vld [vmem:[%s3878_s2 + $0xa68] sm:$0xff] }
  0xb5   :  { %2446 = vmatpush3.bf16.msra.mxu1 %v2445_v3  ;;  %1286 = vmatprep.mubr.f32.mxu1 %v60_v16  ;;  %v393_v3 = vld [vmem:[%s3878_s2 + $0xa60] sm:$0xff]  ;;  %v396_v16 = vld [vmem:[%s3878_s2 + $0xa78] sm:$0xff] }
  0xb6   :  { %2448 = vmatprep.subr.bf16.mxu1 %v2447_v8  ;;  %v411_v8 = vld [vmem:[%s3878_s2 + $0xaf0] sm:$0xff]  ;;  %v2437_v12 = vpack.c.bf16 %v394_v4, %v393_v3 }
  0xb7   :  { %2418 = vmatpush3.bf16.msra.mxu0 %v2417_v15  ;;  %v2439_v14 = vpack.c.bf16 %v412_v9, %v411_v8  ;;  %v395_v15 = vld [vmem:[%s3878_s2 + $0xa70] sm:$0xff] }
  0xb8   :  { %2420 = vmatprep.subr.bf16.mxu0 %v2419_v18  ;;  %v427_v18 = vld [vmem:[%s3878_s2 + $0xb70] sm:$0xff]  ;;  %v2441_v20 = vpack.c.bf16 %v396_v16, %v395_v15 }
  0xb9   :  { %2450 = vmatpush3.bf16.msra.mxu1 %v2449_v17  ;;  %v2471_v17 = vpack.c.bf16 %v444_v11, %v443_v10  ;;  %v2473_v21 = vpack.c.bf16 %v428_v19, %v427_v18 }
  0xba   :  { %2452 = vmatprep.subr.bf16.mxu1 %v2451_v22  ;;  %v57_v22 = vld [vmem:[%s3877_s1 + $0xa0] sm:$0xff] }
  0xbb   :  { %2422 = vmatpush3.bf16.msra.mxu0 %v2421_v28 }
  0xbc   :  { %2424 = vmatprep.subr.bf16.mxu0 %v2423_v30 }
  0xbd   :  { %2454 = vmatpush3.bf16.msra.mxu1 %v2453_v29 }
  0xbe   :  { %2456 = vmatprep.subr.bf16.mxu1 %v2455_v34 }
  0xbf   :  { %2426 = vmatpush3.bf16.msra.mxu0 %v2425_v40 }
  0xc0   :  { %2428 = vmatprep.subr.bf16.mxu0 %v2427_v42 }
  0xc1   :  { %2458 = vmatpush3.bf16.msra.mxu1 %v2457_v41 }
  0xc2   :  { %2460 = vmatprep.subr.bf16.mxu1 %v2459_v46 }
  0xc3   :  { %2430 = vmatpush3.bf16.msra.mxu0 %v2429_v52 }
  0xc4   :  { %2432 = vmatprep.subr.bf16.mxu0 %v2431_v54 }
  0xc5   :  { %2462 = vmatpush3.bf16.msra.mxu1 %v2461_v53 }
  0xc6   :  { %2464 = vmatprep.subr.bf16.mxu1 %v2463_v58  ;;  %v2536_v58 = vmov 0.0  }
  0xc7   :  { %2434 = vmatpush3.bf16.msra.mxu0 %v2433_v0 }
  0xc8   :  { %2436 = vmatprep.subr.bf16.mxu0 %v2435_v2 }
  0xc9   :  { %2466 = vmatpush3.bf16.msra.mxu1 %v2465_v1 }
  0xca   :  { %2468 = vmatprep.subr.bf16.mxu1 %v2467_v6 }
  0xcb   :  { %2438 = vmatpush3.bf16.msra.mxu0 %v2437_v12 }
  0xcc   :  { %2440 = vmatprep.subr.bf16.mxu0 %v2439_v14 }
  0xcd   :  { %2470 = vmatpush3.bf16.msra.mxu1 %v2469_v13 }
  0xce   :  { %2472 = vmatprep.subr.bf16.mxu1 %v2471_v17 }
  0xcf   :  { %2442 = vmatpush3.bf16.msra.mxu0 %v2441_v20 }
  0xd0   :  { %2086 = vmatprep.subr.mxu0 %v2536_v58 }
  0xd1   :  { %2474 = vmatpush3.bf16.msra.mxu1 %v2473_v21  ;;  %v2538_v21 = vmov 683565275  }
  0xd2   :  { %1217 = vmatmul.mubr.f32.vlgmr.msra.gmra.mrb[10].mxu0 %v57_v22 }
  0xd3   :  { %2088 = vmatprep.mubr.msk.f32.mxu0 %vm2537_vm0, %v2536_v58  ;;  %2087 = vmatpush3.msra.mxu0 %v1539_v57 }
  0xd4   :  { %1287 = vmatmul.mubr.f32.vlgmr.msra.gmra.mrb[10].mxu1 %v59_v23  ;;  %v2539_v23 = vmov 2475754826  }
 0x105   :  { %v1696_v24 = vpop.f32.mrb[0].mxu0 }
 0x106   :  { %v1697_v26 = vpop.f32.mrb[1].mxu0 }
 0x107   :  { %v1731_v27 = vpop.f32.mrb[0].mxu1  ;;  %v1698_v28 = vadd.f32 %v1697_v26, %v1696_v24  ;;  %v2540_v26 = vmov 2131351028  }
 0x108   :  { %v1732_v29 = vpop.f32.mrb[1].mxu1 }
 0x109   :  { %v1733_v30 = vadd.f32 %v1732_v29, %v1731_v27  ;;  %v519_v31 = vadd.f32 %v1698_v28, %v1644_v25  ;;  %v2541_v29 = vmov 2102212464  }
 0x10b   :  { %v589_v32 = vadd.f32 %v1733_v30, %v519_v31 }
 0x125   :  { %v1766_v33 = vpop.f32.mrb[2].mxu0 }
 0x126   :  { %v1767_v34 = vpop.f32.mrb[3].mxu0 }
 0x127   :  { %v1801_v35 = vpop.f32.mrb[2].mxu1  ;;  %v1768_v36 = vadd.f32 %v1767_v34, %v1766_v33 }
 0x128   :  { %v1802_v37 = vpop.f32.mrb[3].mxu1 }
 0x129   :  { %v1803_v38 = vadd.f32 %v1802_v37, %v1801_v35  ;;  %v659_v39 = vadd.f32 %v1768_v36, %v589_v32  ;;  %v2542_v32 = vmov 920167782   ;;  %v2543_v35 = vmov 1326507024  }
 0x12b   :  { %v729_v40 = vadd.f32 %v1803_v38, %v659_v39 }
 0x145   :  { %v1836_v41 = vpop.f32.mrb[4].mxu0 }
 0x146   :  { %v1837_v42 = vpop.f32.mrb[5].mxu0 }
 0x147   :  { %v1871_v43 = vpop.f32.mrb[4].mxu1  ;;  %v1838_v44 = vadd.f32 %v1837_v42, %v1836_v41 }
 0x148   :  { %v1872_v45 = vpop.f32.mrb[5].mxu1 }
 0x149   :  { %v1873_v46 = vadd.f32 %v1872_v45, %v1871_v43  ;;  %v799_v47 = vadd.f32 %v1838_v44, %v729_v40 }
 0x14b   :  { %v869_v48 = vadd.f32 %v1873_v46, %v799_v47 }
 0x165   :  { %v1906_v49 = vpop.f32.mrb[6].mxu0 }
 0x166   :  { %v1907_v50 = vpop.f32.mrb[7].mxu0 }
 0x167   :  { %v1941_v51 = vpop.f32.mrb[6].mxu1  ;;  %v1908_v52 = vadd.f32 %v1907_v50, %v1906_v49 }
 0x168   :  { %v1942_v53 = vpop.f32.mrb[7].mxu1 }
 0x169   :  { %v1943_v54 = vadd.f32 %v1942_v53, %v1941_v51  ;;  %v939_v55 = vadd.f32 %v1908_v52, %v869_v48 }
 0x16b   :  { %v1009_v56 = vadd.f32 %v1943_v54, %v939_v55 }
 0x185   :  { %v1976_v59 = vpop.f32.mrb[8].mxu0 }
 0x186   :  { %v1977_v60 = vpop.f32.mrb[9].mxu0 }
 0x187   :  { %v2011_v61 = vpop.f32.mrb[8].mxu1  ;;  %v1978_v62 = vadd.f32 %v1977_v60, %v1976_v59 }
 0x188   :  { %v2012_v63 = vpop.f32.mrb[9].mxu1 }
 0x189   :  { %v2013_v0 = vadd.f32 %v2012_v63, %v2011_v61  ;;  %v1079_v1 = vadd.f32 %v1978_v62, %v1009_v56 }
 0x18b   :  { %v1149_v2 = vadd.f32 %v2013_v0, %v1079_v1 }
 0x1a5   :  { %v2046_v3 = vpop.f32.mrb[10].mxu0 }
 0x1a6   :  { %v2047_v4 = vpop.f32.mrb[11].mxu0 }
 0x1a7   :  { %v2081_v5 = vpop.f32.mrb[10].mxu1  ;;  %v2048_v6 = vadd.f32 %v2047_v4, %v2046_v3 }
 0x1a8   :  { %v2082_v7 = vpop.f32.mrb[11].mxu1 }
 0x1a9   :  { %v2083_v8 = vadd.f32 %v2082_v7, %v2081_v5  ;;  %v1219_v9 = vadd.f32 %v2048_v6, %v1149_v2 }
 0x1ab   :  { %v3813_v10 = vadd.f32 %v2083_v8, %v1219_v9 }
 0x1ad   :  { %v1295_v11 = vand.u32 2139095040, %v3813_v10  ;;  %v1292_v15 = vand.u32 2147483647, %v3813_v10  ;;  %vm1294_vm8 = vcmp.lt.s32.totalorder %v3813_v10, 0  ;;  %vm1384_vm0 = vweird.f32 %v3813_v10 }
 0x1af   :  { %v1296_v12 = vshrl.u32 %v1295_v11, 23  ;;  %v1299_v18 = vand.u32 8388607, %v1292_v15  ;;  %vm1293_vm9 = vcmp.le.f32.partialorder %v1292_v15, 0.7853982 }
 0x1b1   :  { %v1645_v13 = vadd.s32 4294967169, %v1296_v12  ;;  %v1300_v37 = vor.u32 8388608, %v1299_v18 }
 0x1b3   :  { %v1302_v14 = vadd.s32 1, %v1645_v13  ;;  %v1340_v51 = vshll.u32 %v1300_v37, 8 }
 0x1b5   :  { %vm1303_vm1 = vcmp.gt.s32.totalorder %v1302_v14, 0 }
 0x1b6   :  { %v1304_v16 = vsel %vm1303_vm1, %v1302_v14, 0  ;;  %vm1547_vm1 = vcmask 64512  }
 0x1b7   :  { %v1306_v17 = vand.u32 31, %v1304_v16  ;;  %v1305_v20 = vshrl.u32 %v1304_v16, 5 }
 0x1b9   :  { %v1307_v19 = vsub.s32 32, %v1306_v17  ;;  %v1309_v22 = vshll.u32 %v2538_v21, %v1306_v17  ;;  %v1312_v24 = vshll.u32 %v2539_v23, %v1306_v17  ;;  %v1315_v28 = vshll.u32 %v2540_v26, %v1306_v17 }
 0x1ba   :  { %v1318_v31 = vshll.u32 %v2541_v29, %v1306_v17  ;;  %v1321_v34 = vshll.u32 %v2542_v32, %v1306_v17  ;;  %vm1324_vm2 = vcmp.lt.s32.totalorder %v1305_v20, 1  ;;  %vm1327_vm3 = vcmp.lt.s32.totalorder %v1305_v20, 4 }
 0x1bb   :  { %v1310_v25 = vshrl.u32 %v2539_v23, %v1307_v19  ;;  %v1313_v27 = vshrl.u32 %v2540_v26, %v1307_v19  ;;  %v1316_v30 = vshrl.u32 %v2541_v29, %v1307_v19  ;;  %v1319_v33 = vshrl.u32 %v2542_v32, %v1307_v19 }
 0x1bc   :  { %v1322_v36 = vshrl.u32 %v2543_v35, %v1307_v19  ;;  %v1308_v46 = vshrl.u32 %v2538_v21, %v1307_v19  ;;  %vm1326_vm4 = vcmp.lt.s32.totalorder %v1305_v20, 3  ;;  %vm1325_vm5 = vcmp.lt.s32.totalorder %v1305_v20, 2 }
 0x1bd   :  { %v1311_v38 = vor.u32 %v1310_v25, %v1309_v22  ;;  %v1314_v39 = vor.u32 %v1313_v27, %v1312_v24  ;;  %v1317_v40 = vor.u32 %v1316_v30, %v1315_v28  ;;  %v1320_v41 = vor.u32 %v1319_v33, %v1318_v31 }
 0x1be   :  { %v1323_v42 = vor.u32 %v1322_v36, %v1321_v34  ;;  %v1508_v33 = vstv %s3833_s4  ;;  %v1510_v34 = vstv %s3835_s18  ;;  %v1513_v35 = vstv %s3837_s19 }
 0x1bf   :  { %v1329_v43 = vsel %vm1327_vm3, %v1317_v40, 2102212464  ;;  %v1332_v44 = vsel %vm1324_vm2, %v1311_v38, %v1314_v39  ;;  %v1336_v45 = vsel %vm1324_vm2, %v1314_v39, %v1317_v40  ;;  %v1333_v47 = vsel %vm1327_vm3, %v1320_v41, 920167782 }
 0x1c0   :  { %v1337_v48 = vsel %vm1327_vm3, %v1323_v42, 1326507024  ;;  %v1334_v49 = vsel %vm1326_vm4, %v1317_v40, %v1333_v47  ;;  %v1328_v52 = vsel %vm1324_vm2, %v1308_v46, %v1311_v38  ;;  %v1330_v53 = vsel %vm1326_vm4, %v1314_v39, %v1329_v43 }
 0x1c1   :  { %v1338_v50 = vsel %vm1326_vm4, %v1320_v41, %v1337_v48  ;;  %v1335_v54 = vsel %vm1325_vm5, %v1332_v44, %v1334_v49  ;;  %v1331_v60 = vsel %vm1325_vm5, %v1328_v52, %v1330_v53  ;;  %v1515_v38 = vstv %s3839_s20 }
 0x1c2   :  { %v1339_v55 = vsel %vm1325_vm5, %v1336_v45, %v1338_v50  ;;  %v3822_v58 = vmul.u32.u64.low %v1340_v51, %v1335_v54  ;;  %v3823_v59 = vmul.u32.u64.high %v1340_v51, %v1335_v54, %v3822_v58  ;;  %v1347_v62 = vmul.u32 %v1340_v51, %v1331_v60 }
 0x1c3   :  { %v3819_v56 = vmul.u32.u64.low %v1340_v51, %v1339_v55  ;;  %v3820_v57 = vmul.u32.u64.high %v1340_v51, %v1339_v55, %v3819_v56  ;;  %v1518_v39 = vstv %s3841_s21  ;;  %v1520_v40 = vstv %s3843_s22 }
 0x1c4   :  { %v1350_v61 = vadd.s32 1, %v3823_v59  ;;  %v1523_v42 = vstv %s3845_s23  ;;  %v1525_v49 = vstv %s3847_s24  ;;  %v1529_v52 = vstv %s3849_s25 }
 0x1c5   :  { %vm1349_vm6 = vc.u32 %v3820_v57, %v3822_v58  ;;  %v1348_v11 = vadd.s32 %v3822_v58, %v3820_v57  ;;  %vm1627_vm2 = vcmask 80896  }
 0x1c6   :  { %v1351_v63 = vsel %vm1349_vm6, %v1350_v61, %v3823_v59 }
 0x1c7   :  { %v1352_v0 = vadd.s32 %v1351_v63, %v1347_v62 }
 0x1c9   :  { %v1353_v1 = vadd.s32 536870912, %v1352_v0 }
 0x1cb   :  { %v1354_v2 = vshrl.u32 %v1353_v1, 30 }
 0x1cd   :  { %v1355_v3 = vshll.u32 %v1354_v2, 30  ;;  %v1378_v24 = vsub.s32 4, %v1354_v2 }
 0x1cf   :  { %v1356_v4 = vsub.s32 %v1352_v0, %v1355_v3  ;;  %v1379_v27 = vsel %vm1294_vm8, %v1378_v24, %v1354_v2 }
 0x1d0   :  { %v1381_v29 = vsel %vm1293_vm9, 0, %v1379_v27 }
 0x1d1   :  { %v1358_v5 = vsub.s32 0, %v1356_v4  ;;  %v1488_v15 = vadd.s32 3, %v1381_v29  ;;  %v1385_v30 = vand.u32 3, %v1381_v29 }
 0x1d3   :  { %v1646_v6 = vmin.u32 %v1358_v5, %v1356_v4  ;;  %v1489_v31 = vand.u32 3, %v1488_v15  ;;  %vm1390_vm10 = vcmp.eq.s32.totalorder %v1385_v30, 2  ;;  %vm1387_vm12 = vcmp.eq.s32.totalorder %v1385_v30, 0 }
 0x1d4   :  { %vm1386_vm14 = vcmp.lt.s32.totalorder %v1385_v30, 2 }
 0x1d5   :  { %v1360_v7 = vclz %v1646_v6  ;;  %vm1494_vm11 = vcmp.eq.s32.totalorder %v1489_v31, 2  ;;  %vm1491_vm13 = vcmp.eq.s32.totalorder %v1489_v31, 0  ;;  %vm1490_vm15 = vcmp.lt.s32.totalorder %v1489_v31, 2 }
 0x1d7   :  { %v1647_v8 = vadd.s32 4294967294, %v1360_v7 }
 0x1d9   :  { %vm1648_vm7 = vcmp.lt.s32.totalorder %v1647_v8, 0 }
 0x1da   :  { %v1363_v9 = vsel %vm1648_vm7, 0, %v1647_v8 }
 0x1db   :  { %v1364_v12 = vsub.s32 32, %v1363_v9  ;;  %v1368_v13 = vsub.s32 4294967266, %v1363_v9  ;;  %v1365_v14 = vshll.u32 %v1356_v4, %v1363_v9 }
 0x1dd   :  { %v1366_v16 = vshrl.u32 %v1348_v11, %v1364_v12  ;;  %v1369_v17 = vadd.s32 127, %v1368_v13  ;;  %v1661_v11 = vld [vmem:[%s3881_s5] ss:$0 sm:$0xff] }
 0x1df   :  { %v1367_v18 = vor.u32 %v1366_v16, %v1365_v14  ;;  %v1370_v19 = vshll.u32 %v1369_v17, 23 }
 0x1e1   :  { %v1371_v20 = vor.u32 4788187, %v1370_v19  ;;  %v1374_v22 = vcvt.s32.f32 %v1367_v18 }
 0x1e3   :  { %v1372_v21 = vand.u32 2147483647, %v1371_v20 }
 0x1e5   :  { %v1375_v23 = vmul.f32 %v1374_v22, %v1372_v21 }
 0x1e7   :  { %v1376_v25 = vxor.u32 2147483648, %v1375_v23 }
 0x1e9   :  { %v1377_v26 = vsel %vm1294_vm8, %v1376_v25, %v1375_v23 }
 0x1ea   :  { %v1380_v28 = vsel %vm1293_vm9, %v3813_v10, %v1377_v26 }
 0x1eb   :  { %2489 = vcosq.f32 %v1380_v28 }
 0x1ec   :  { %2491 = vsinq.f32 %v1380_v28 }
 0x1f5   :  { %v2490_v32 = vpop.eup %2489 }
 0x1f6   :  { %v2492_v36 = vpop.eup %2491  ;;  %v1391_v37 = vxor.u32 2147483648, %v2490_v32 }
 0x1f7   :  { %v1388_v41 = vxor.u32 2147483648, %v2492_v36 }
 0x1f8   :  { %v1392_v43 = vsel %vm1390_vm10, %v1391_v37, %v2492_v36  ;;  %v1496_v44 = vsel %vm1494_vm11, %v1391_v37, %v2492_v36 }
 0x1f9   :  { %v1389_v45 = vsel %vm1387_vm12, %v2490_v32, %v1388_v41  ;;  %v1493_v46 = vsel %vm1491_vm13, %v2490_v32, %v1388_v41 }
 0x1fa   :  { %v1393_v47 = vsel %vm1386_vm14, %v1389_v45, %v1392_v43  ;;  %v1497_v48 = vsel %vm1490_vm15, %v1493_v46, %v1496_v44 }
 0x1fb   :  { %v1394_v50 = vsel %vm1384_vm0, nan, %v1393_v47  ;;  %v1498_v51 = vsel %vm1384_vm0, nan, %v1497_v48 }
 0x1fc   :  { %v1509_v53 = vmul.f32 %v1508_v33, %v1498_v51  ;;  %v1511_v54 = vmul.f32 %v1510_v34, %v1394_v50  ;;  %v1514_v55 = vmul.f32 %v1513_v35, %v1498_v51  ;;  %v1516_v56 = vmul.f32 %v1515_v38, %v1394_v50 }
 0x1fd   :  { %v1519_v57 = vmul.f32 %v1518_v39, %v1498_v51  ;;  %v1521_v58 = vmul.f32 %v1520_v40, %v1394_v50  ;;  %v1524_v59 = vmul.f32 %v1523_v42, %v1394_v50  ;;  %v1526_v60 = vmul.f32 %v1525_v49, %v1498_v51 }
 0x1fe   :  { %v1512_v61 = vadd.f32 %v1511_v54, %v1509_v53  ;;  %v1517_v62 = vadd.f32 %v1516_v56, %v1514_v55  ;;  %v1532_v63 = vmul.f32 %v1523_v42, %v1498_v51  ;;  %v1533_v0 = vmul.f32 %v1525_v49, %v1394_v50 }
 0x1ff   :  { %v1522_v1 = vadd.f32 %v1521_v58, %v1519_v57  ;;  %v1527_v10 = vsub.f32 %v1524_v59, %v1526_v60 }
 0x200   :  { %v1530_v2 = vmul.f32 %v1529_v52, %v1517_v62  ;;  %v1534_v3 = vadd.f32 %v1533_v0, %v1532_v63 }
 0x201   :  { %v1528_v4 = vmul.f32 %v1527_v10, %v1512_v61 }
 0x202   :  { %v1535_v6 = vmul.f32 %v1534_v3, %v1522_v1 }
 0x203   :  { %v1531_v5 = vadd.f32 %v1530_v2, %v1528_v4 }
 0x205   :  { %v1536_v7 = vadd.f32 %v1535_v6, %v1531_v5 }
 0x207   :  { %v1537_v8 = vadd.f32 1.0, %v1536_v7 }
 0x209   :  { %v1538_v9 = vmul.f32 0.5, %v1537_v8 }
 0x20b   :  { %2089 = vmatmul.mubr.msk.f32.vlgmr.msra.gmra.mrb[12].mxu0 %vm1547_vm1, %v1538_v9 }
 0x2de   :  { %v1617_v12 = vpop.f32.mrb[12].mxu0 }
 0x2df   :  { %v1618_v13 = vadd.f32 %v1661_v11, %v1617_v12  ;;  %v2090_v14 = vpop.f32.mrb[13].mxu0 }
 0x2e1   :  { %v1663_v16 = vmul.f32 -1.442695, %v1618_v13 }
 0x2e3   :  { %2493 = vpow2.f32 %v1663_v16 }
 0x2ed   :  { %v2494_v17 = vpop.eup %2493 }
 0x2ee   :  { %v1624_v18 = vadd.f32 1.0, %v2494_v17 }
 0x2f0   :  { %2495 = vrcp.f32 %v1624_v18 }
 0x2fa   :  { %v2496_v19 = vpop.eup %2495 }
 0x2fb   :  { %1628 = vst.msk [vmem:[#allocation5] sm:$0xff] %vm1627_vm2, %v2496_v19 }
 0x2fc   :  { %2520 = shalt.err (!%p2517_p9)
}
 0x2fd   :  { %s2521_s7 = scalar_lea.hbm %s3882_s6, 128 }
 0x2fe   :  { %p2522_p10 = scmp.ne.s32.totalorder %s3882_s6, %s2521_s7  ;;  %p2525_p11 = scmp.lt.u32.totalorder %s2521_s7, %s3882_s6 }
 0x300   :  { %p2527_p12 = pnand %p2525_p11, %p2522_p10 }
 0x302   :  { %2530 = shalt.err (!%p2527_p12)
}
 0x303   :  { %1638 = dma.vmem_to_hbm [thread:$0]  %s1636_s29, 128, %s3882_s6, [#allocation3]  }
 0x304   :  { %2533 = dma.done.wait [#allocation3], 128  }
 0x305   :  { %2534 = vsyncadd [#allocation3], 4294967168 }
 0x306   :  { %1642 = vsyncpa [#allocation3], 1 }
 0x307   :  { %1643 = vsyncpa [#allocation4], 1 }

</bundles_post_ra>
